<compile_context>
chip_gen: v6e
topology: v6e:2x2x1
jax: 0.10.0
libtpu: 0.0.40
codegen_flags: <defaults>
</compile_context>

<pallas_src>
import functools

import jax
import jax.numpy as jnp
from jax.experimental import pallas as pl
from jax.experimental.pallas import tpu as pltpu

BN_EPS = 1e-5
MAX_TILE_P = 2048          # sweepable (1024/2048/4096); VMEM stays far under limits
OUT_DTYPE = jnp.bfloat16   # kernel-side output dtype (cast back to x.dtype in wrapper)


def _round_up(x, m):
    return ((x + m - 1) // m) * m


def _choose_tile_p(p_true):
    """Lane-aligned P tile; big, but always >=2 grid steps when possible (v7x megacore)."""
    tp_full = _round_up(max(p_true, 1), 128)
    if tp_full <= 256:
        return tp_full
    half = _round_up(-(-p_true // 2), 128)
    return min(MAX_TILE_P, half)


# ----------------------------------------------------------------------------
# Pass 1: conv matmul + per-channel partial sum / sum-of-squares.
# acc is (Cout, TILE_P): channels on sublanes, pixels on lanes.
# ----------------------------------------------------------------------------
def conv_stats_kernel(w_ref, p_ref, sum_ref, sq_ref):
    acc = jnp.dot(w_ref[...], p_ref[...], preferred_element_type=jnp.float32)
    sum_ref[0] = jnp.sum(acc, axis=1, keepdims=True)        # (Cout, 1)
    sq_ref[0] = jnp.sum(acc * acc, axis=1, keepdims=True)   # (Cout, 1)


# ----------------------------------------------------------------------------
# Pass 2: conv matmul recompute + fused normalize (single FMA) + ReLU.
# ----------------------------------------------------------------------------
def conv_bn_relu_kernel(w_ref, p_ref, scale_ref, shift_ref, o_ref):
    acc = jnp.dot(w_ref[...], p_ref[...], preferred_element_type=jnp.float32)
    y = acc * scale_ref[...] + shift_ref[...]                # (Cout,1) lane-broadcast
    o_ref[...] = jnp.maximum(y, 0.0).astype(o_ref.dtype)


# ----------------------------------------------------------------------------
# Wrapper-side im2col (transposed: K rows, P columns).  Row order matches the
# PyTorch weight layout flattening (Cin, KD, KH, KW).
# TODO(synk): replace with on-chip im2col via manual halo DMA (see header).
# ----------------------------------------------------------------------------
def im2col_3d_transposed(x, kd, kh, kw, stride):
    n, c, d, h, w = x.shape
    do = (d - kd) // stride + 1
    ho = (h - kh) // stride + 1
    wo = (w - kw) // stride + 1
    rows = []
    for ci in range(c):
        for a in range(kd):
            for b in range(kh):
                for e in range(kw):
                    rows.append(x[:, ci,
                                  a:a + (do - 1) * stride + 1:stride,
                                  b:b + (ho - 1) * stride + 1:stride,
                                  e:e + (wo - 1) * stride + 1:stride])
    pt = jnp.stack(rows, axis=0)                              # (K, N, Do, Ho, Wo)
    return pt.reshape(c * kd * kh * kw, n * do * ho * wo), (do, ho, wo)


# ----------------------------------------------------------------------------
# ConvBNRelu3D forward (NCDHW in, NCDHW out), BatchNorm in training mode.
# ----------------------------------------------------------------------------
@functools.partial(jax.jit, static_argnames=("stride",))
def conv_bn_relu_3d(x, weight, bias, gamma, beta, *, stride=1):
    """x: (N, Cin, D, H, W); weight: (Cout, Cin, KD, KH, KW)."""
    del bias  # exactly cancelled by training-mode BatchNorm's batch-mean subtraction
    n, cin, d, h, w = x.shape
    cout, _, kd, kh, kw = weight.shape

    patches_t, (do, ho, wo) = im2col_3d_transposed(x, kd, kh, kw, stride)  # (K, P) f32
    k_dim, p_true = patches_t.shape

    kpad = _round_up(k_dim, 16)          # bf16 sublane packing only; NOT 128
    tp = _choose_tile_p(p_true)
    nt = pl.cdiv(p_true, tp)
    p_pad = nt * tp

    # Zero padding is exact: zero K rows / zero P columns contribute nothing to
    # the conv outputs or the statistics.
    patches_p = jnp.pad(patches_t, ((0, kpad - k_dim), (0, p_pad - p_true)))
    patches_p = patches_p.astype(jnp.bfloat16)
    w_p = jnp.pad(weight.reshape(cout, k_dim),
                  ((0, 0), (0, kpad - k_dim))).astype(jnp.bfloat16)

    # Per-step working set (patches double-buffer dominates); derive the scoped
    # VMEM limit from it with headroom, capped well below v7x's 64 MiB physical.
    step_bytes = 2 * (kpad * tp * 2) + 2 * (cout * kpad * 2) + 2 * (cout * tp * 4)
    cparams = pltpu.CompilerParams(
        dimension_semantics=("parallel",),
        vmem_limit_bytes=int(min(48 * 2**20, max(4 * step_bytes, 16 * 2**20))))

    # ---- Pass 1: per-tile partial sums for the BN batch statistics ----------
    part_sum, part_sq = pl.pallas_call(
        conv_stats_kernel,
        out_shape=(jax.ShapeDtypeStruct((nt, cout, 1), jnp.float32),
                   jax.ShapeDtypeStruct((nt, cout, 1), jnp.float32)),
        grid_spec=pltpu.PrefetchScalarGridSpec(
            num_scalar_prefetch=0,
            grid=(nt,),
            in_specs=[
                pl.BlockSpec((cout, kpad), lambda i: (0, 0)),   # weights (resident)
                pl.BlockSpec((kpad, tp), lambda i: (0, i)),     # patches^T tile
            ],
            out_specs=(pl.BlockSpec((1, cout, 1), lambda i: (i, 0, 0)),
                       pl.BlockSpec((1, cout, 1), lambda i: (i, 0, 0))),
        ),
        compiler_params=cparams,
    )(w_p, patches_p)

    # ---- Tiny finalize in plain JAX on (Cout,) vectors -----------------------
    # Note: E[x^2]-E[x]^2 in f32; fine for zero-mean activations, switch to
    # centered/Welford partials if |mean| >> std in your data regime.
    sum_c = jnp.sum(part_sum[:, :, 0], axis=0)
    sq_c = jnp.sum(part_sq[:, :, 0], axis=0)
    mean = sum_c / p_true
    var = jnp.maximum(sq_c / p_true - mean * mean, 0.0)
    scale = gamma.astype(jnp.float32) * jax.lax.rsqrt(var + BN_EPS)
    shift = beta.astype(jnp.float32) - mean * scale
    scale_col = scale.reshape(cout, 1)
    shift_col = shift.reshape(cout, 1)

    # ---- Pass 2: recompute matmul, normalize + ReLU, bf16 channel-dense out --
    out_t = pl.pallas_call(
        conv_bn_relu_kernel,
        out_shape=jax.ShapeDtypeStruct((cout, p_pad), OUT_DTYPE),
        grid_spec=pltpu.PrefetchScalarGridSpec(
            num_scalar_prefetch=0,
            grid=(nt,),
            in_specs=[
                pl.BlockSpec((cout, kpad), lambda i: (0, 0)),
                pl.BlockSpec((kpad, tp), lambda i: (0, i)),
                pl.BlockSpec((cout, 1), lambda i: (0, 0)),
                pl.BlockSpec((cout, 1), lambda i: (0, 0)),
            ],
            out_specs=pl.BlockSpec((cout, tp), lambda i: (0, i)),
        ),
        compiler_params=cparams,
    )(w_p, patches_p, scale_col, shift_col)

    # Channels already lead the layout: only a cheap leading-axis swap remains.
    out = out_t[:, :p_true].reshape(cout, n, do, ho, wo)
    return jnp.transpose(out, (1, 0, 2, 3, 4)).astype(x.dtype)


# ----------------------------------------------------------------------------
# Pure-JAX f32 reference (mirrors PyTorch Conv3d + BatchNorm3d(train) + ReLU)
# ----------------------------------------------------------------------------
def reference(x, weight, bias, gamma, beta, *, stride=1):
    conv = jax.lax.conv_general_dilated(
        x, weight, window_strides=(stride,) * 3, padding="VALID",
        dimension_numbers=("NCDHW", "OIDHW", "NCDHW"))
    conv = conv + bias.reshape(1, -1, 1, 1, 1)
    mean = jnp.mean(conv, axis=(0, 2, 3, 4), keepdims=True)
    var = jnp.mean((conv - mean) ** 2, axis=(0, 2, 3, 4), keepdims=True)
    y = (conv - mean) * jax.lax.rsqrt(var + BN_EPS)
    y = y * gamma.reshape(1, -1, 1, 1, 1) + beta.reshape(1, -1, 1, 1, 1)
    return jnp.maximum(y, 0.0)


if __name__ == "__main__":
    # Module defaults: ConvBNRelu3D(in_channels=1, out_channels=24,
    # kernel_size=(51, 3, 3), padding=0, stride=1); small spatial dims.
    N, CIN, D, H, W = 2, 1, 56, 10, 10
    COUT, KD, KH, KW = 24, 51, 3, 3
    STRIDE = 1

    key = jax.random.PRNGKey(0)
    kx, kw_, kb, kg, kbt = jax.random.split(key, 5)

    x = jax.random.normal(kx, (N, CIN, D, H, W), dtype=jnp.float32)
    fan_in = CIN * KD * KH * KW
    bound = 1.0 / (fan_in ** 0.5)
    weight = jax.random.uniform(kw_, (COUT, CIN, KD, KH, KW),
                                minval=-bound, maxval=bound, dtype=jnp.float32)
    bias = jax.random.uniform(kb, (COUT,), minval=-bound, maxval=bound,
                              dtype=jnp.float32)
    gamma = jax.random.uniform(kg, (COUT,), minval=0.5, maxval=1.5,
                               dtype=jnp.float32)
    beta = 0.1 * jax.random.normal(kbt, (COUT,), dtype=jnp.float32)

    out = jax.block_until_ready(
        conv_bn_relu_3d(x, weight, bias, gamma, beta, stride=STRIDE))
    ref = jax.block_until_ready(
        reference(x, weight, bias, gamma, beta, stride=STRIDE))

    assert out.shape == ref.shape, (out.shape, ref.shape)
    # bf16 matmul operands / bf16 output (f32 accumulation & BN math) -> bf16 tolerance.
    max_err = float(jnp.max(jnp.abs(out - ref)))
    assert jnp.allclose(out, ref, atol=3e-2, rtol=3e-2), max_err

    print("KERNEL_OK")
</pallas_src>

<mosaic_0001>
module attributes {stable_mosaic.version = 11 : i64} {
  func.func @conv_stats_kernel(%arg0: i32, %arg1: memref<24x464xbf16, #tpu.memory_space<vmem>>, %arg2: memref<464x384xbf16, #tpu.memory_space<vmem>>, %arg3: memref<1x24x1xf32, #tpu.memory_space<vmem>>, %arg4: memref<1x24x1xf32, #tpu.memory_space<vmem>>) attributes {dimension_semantics = [#tpu.dimension_semantics<parallel>], iteration_bounds = array<i64: 2>, scalar_prefetch = 0 : i64, scratch_operands = 0 : i64, tpu.core_type = #tpu.core_type<tc>, window_params = [{pipeline_mode = #tpu.pipeline_mode<synchronous>, transform_indices = @transform_0, window_bounds = array<i64: 24, 464>}, {transform_indices = @transform_1, window_bounds = array<i64: 464, 384>}, {transform_indices = @transform_2, window_bounds = array<i64: 1, 24, 1>}, {transform_indices = @transform_3, window_bounds = array<i64: 1, 24, 1>}]} {
    %c0 = arith.constant 0 : index
    %c0_0 = arith.constant 0 : index
    %0 = vector.load %arg1[%c0, %c0_0] : memref<24x464xbf16, #tpu.memory_space<vmem>>, vector<24x464xbf16>
    %c0_1 = arith.constant 0 : index
    %c0_2 = arith.constant 0 : index
    %1 = vector.load %arg2[%c0_1, %c0_2] : memref<464x384xbf16, #tpu.memory_space<vmem>>, vector<464x384xbf16>
    %cst = arith.constant dense<0.000000e+00> : vector<24x384xf32>
    %2 = tpu.matmul %0, %1, %cst {dimension_numbers = #tpu.dot_dimension_numbers<[1], [0], [0], [1], [0, 0, 1, 1], [], []>} : vector<24x464xbf16>, vector<464x384xbf16>, vector<24x384xf32> -> vector<24x384xf32>
    %cst_3 = arith.constant dense<0.000000e+00> : vector<24xf32>
    %3 = vector.multi_reduction <add>, %2, %cst_3 [1] : vector<24x384xf32> to vector<24xf32>
    %4 = vector.shape_cast %3 : vector<24xf32> to vector<24x1xf32>
    %c0_4 = arith.constant 0 : index
    %c0_5 = arith.constant 0 : index
    %c0_6 = arith.constant 0 : index
    %5 = vector.load %arg3[%c0_4, %c0_5, %c0_6] : memref<1x24x1xf32, #tpu.memory_space<vmem>>, vector<1x24x1xf32>
    %6 = vector.shape_cast %5 : vector<1x24x1xf32> to vector<24x1xf32>
    %7 = vector.shape_cast %4 : vector<24x1xf32> to vector<1x24x1xf32>
    tpu.vector_store %arg3[%c0_4, %c0_5, %c0_6], %7 {strides = array<i32>} : memref<1x24x1xf32, #tpu.memory_space<vmem>>, vector<1x24x1xf32>,
    %8 = arith.mulf %2, %2 : vector<24x384xf32>
    %cst_7 = arith.constant dense<0.000000e+00> : vector<24xf32>
    %9 = vector.multi_reduction <add>, %8, %cst_7 [1] : vector<24x384xf32> to vector<24xf32>
    %10 = vector.shape_cast %9 : vector<24xf32> to vector<24x1xf32>
    %c0_8 = arith.constant 0 : index
    %c0_9 = arith.constant 0 : index
    %c0_10 = arith.constant 0 : index
    %11 = vector.load %arg4[%c0_8, %c0_9, %c0_10] : memref<1x24x1xf32, #tpu.memory_space<vmem>>, vector<1x24x1xf32>
    %12 = vector.shape_cast %11 : vector<1x24x1xf32> to vector<24x1xf32>
    %13 = vector.shape_cast %10 : vector<24x1xf32> to vector<1x24x1xf32>
    tpu.vector_store %arg4[%c0_8, %c0_9, %c0_10], %13 {strides = array<i32>} : memref<1x24x1xf32, #tpu.memory_space<vmem>>, vector<1x24x1xf32>,
    return
  }
  func.func @transform_0(%arg0: i32) -> (i32, i32) {
    %c0_i32 = arith.constant 0 : i32
    %c0_i32_0 = arith.constant 0 : i32
    %c0_i32_1 = arith.constant 0 : i32
    return %c0_i32, %c0_i32_0 : i32, i32
  }
  func.func @transform_1(%arg0: i32) -> (i32, i32) {
    %c0_i32 = arith.constant 0 : i32
    %c0_i32_0 = arith.constant 0 : i32
    return %c0_i32, %arg0 : i32, i32
  }
  func.func @transform_2(%arg0: i32) -> (i32, i32, i32) {
    %c0_i32 = arith.constant 0 : i32
    %c0_i32_0 = arith.constant 0 : i32
    %c0_i32_1 = arith.constant 0 : i32
    return %arg0, %c0_i32, %c0_i32_0 : i32, i32, i32
  }
  func.func @transform_3(%arg0: i32) -> (i32, i32, i32) {
    %c0_i32 = arith.constant 0 : i32
    %c0_i32_0 = arith.constant 0 : i32
    %c0_i32_1 = arith.constant 0 : i32
    return %arg0, %c0_i32, %c0_i32_0 : i32, i32, i32
  }
}

module attributes {stable_mosaic.version = 11 : i64} {
  func.func @conv_bn_relu_kernel(%arg0: i32, %arg1: memref<24x464xbf16, #tpu.memory_space<vmem>>, %arg2: memref<464x384xbf16, #tpu.memory_space<vmem>>, %arg3: memref<24x1xf32, #tpu.memory_space<vmem>>, %arg4: memref<24x1xf32, #tpu.memory_space<vmem>>, %arg5: memref<24x384xbf16, #tpu.memory_space<vmem>>) attributes {dimension_semantics = [#tpu.dimension_semantics<parallel>], iteration_bounds = array<i64: 2>, scalar_prefetch = 0 : i64, scratch_operands = 0 : i64, tpu.core_type = #tpu.core_type<tc>, window_params = [{pipeline_mode = #tpu.pipeline_mode<synchronous>, transform_indices = @transform_0, window_bounds = array<i64: 24, 464>}, {transform_indices = @transform_1, window_bounds = array<i64: 464, 384>}, {pipeline_mode = #tpu.pipeline_mode<synchronous>, transform_indices = @transform_2, window_bounds = array<i64: 24, 1>}, {pipeline_mode = #tpu.pipeline_mode<synchronous>, transform_indices = @transform_3, window_bounds = array<i64: 24, 1>}, {transform_indices = @transform_4, window_bounds = array<i64: 24, 384>}]} {
    %c0 = arith.constant 0 : index
    %c0_0 = arith.constant 0 : index
    %0 = vector.load %arg1[%c0, %c0_0] : memref<24x464xbf16, #tpu.memory_space<vmem>>, vector<24x464xbf16>
    %c0_1 = arith.constant 0 : index
    %c0_2 = arith.constant 0 : index
    %1 = vector.load %arg2[%c0_1, %c0_2] : memref<464x384xbf16, #tpu.memory_space<vmem>>, vector<464x384xbf16>
    %cst = arith.constant dense<0.000000e+00> : vector<24x384xf32>
    %2 = tpu.matmul %0, %1, %cst {dimension_numbers = #tpu.dot_dimension_numbers<[1], [0], [0], [1], [0, 0, 1, 1], [], []>} : vector<24x464xbf16>, vector<464x384xbf16>, vector<24x384xf32> -> vector<24x384xf32>
    %c0_3 = arith.constant 0 : index
    %c0_4 = arith.constant 0 : index
    %3 = vector.load %arg3[%c0_3, %c0_4] : memref<24x1xf32, #tpu.memory_space<vmem>>, vector<24x1xf32>
    %4 = vector.broadcast %3 : vector<24x1xf32> to vector<24x384xf32>
    %5 = arith.mulf %2, %4 : vector<24x384xf32>
    %c0_5 = arith.constant 0 : index
    %c0_6 = arith.constant 0 : index
    %6 = vector.load %arg4[%c0_5, %c0_6] : memref<24x1xf32, #tpu.memory_space<vmem>>, vector<24x1xf32>
    %7 = vector.broadcast %6 : vector<24x1xf32> to vector<24x384xf32>
    %8 = arith.addf %5, %7 : vector<24x384xf32>
    %cst_7 = arith.constant 0.000000e+00 : f32
    %9 = vector.broadcast %cst_7 : f32 to vector<24x384xf32>
    %10 = arith.maximumf %8, %9 : vector<24x384xf32>
    %11 = arith.truncf %10 : vector<24x384xf32> to vector<24x384xbf16>
    %c0_8 = arith.constant 0 : index
    %c0_9 = arith.constant 0 : index
    %12 = vector.load %arg5[%c0_8, %c0_9] : memref<24x384xbf16, #tpu.memory_space<vmem>>, vector<24x384xbf16>
    tpu.vector_store %arg5[%c0_8, %c0_9], %11 {strides = array<i32>} : memref<24x384xbf16, #tpu.memory_space<vmem>>, vector<24x384xbf16>,
    return
  }
  func.func @transform_0(%arg0: i32) -> (i32, i32) {
    %c0_i32 = arith.constant 0 : i32
    %c0_i32_0 = arith.constant 0 : i32
    %c0_i32_1 = arith.constant 0 : i32
    return %c0_i32, %c0_i32_0 : i32, i32
  }
  func.func @transform_1(%arg0: i32) -> (i32, i32) {
    %c0_i32 = arith.constant 0 : i32
    %c0_i32_0 = arith.constant 0 : i32
    return %c0_i32, %arg0 : i32, i32
  }
  func.func @transform_2(%arg0: i32) -> (i32, i32) {
    %c0_i32 = arith.constant 0 : i32
    %c0_i32_0 = arith.constant 0 : i32
    %c0_i32_1 = arith.constant 0 : i32
    return %c0_i32, %c0_i32_0 : i32, i32
  }
  func.func @transform_3(%arg0: i32) -> (i32, i32) {
    %c0_i32 = arith.constant 0 : i32
    %c0_i32_0 = arith.constant 0 : i32
    %c0_i32_1 = arith.constant 0 : i32
    return %c0_i32, %c0_i32_0 : i32, i32
  }
  func.func @transform_4(%arg0: i32) -> (i32, i32) {
    %c0_i32 = arith.constant 0 : i32
    %c0_i32_0 = arith.constant 0 : i32
    return %c0_i32, %arg0 : i32, i32
  }
}

</mosaic_0001>

<bundles_post_ra>
// kernel: conv_bn_relu_3d.2
= control target key start
LH: loop header
LB: loop body
LE: loop exit
PB: predicated region body
PF: predicated region fallthrough
CT: control target
= control target key end

     0   :  { %s1860_s12 = smov 0   ;;  %s1862_s13 = smov 0   ;;  %s2301_s0 = inlined_call_operand.vmem [shape: bf16[24,464], index: 0, kind: input, shape index: {}]   ;;  %s2302_s1 = inlined_call_operand.vmem [shape: bf16[464,768], index: 1, kind: input, shape index: {}]   ;;  %s2303_s2 = inlined_call_operand.vmem [shape: f32[2,24,1], index: 2, kind: output, shape index: {0}]   ;;  %s2304_s3 = inlined_call_operand.vmem [shape: f32[2,24,1], index: 3, kind: output, shape index: {1}]  }
   0x1   :  { %s1864_s14 = smov 0  }
   0x2 LB: > { %s1407_s15 = sadd.s32 4294967295, %s1837_s14   ;;  %s1877_s16 = sadd.s32 1, %s1837_s14   ;;  %s1837_s14 = sphi %s1864_s14, %s2307_s14   ;;  %s1833_s13 = sphi %s1862_s13, %s2306_s13   ;;  %s1829_s12 = sphi %s1860_s12, %s2305_s12  }
   0x3   : > { %s39_s17 = ssub.s32 %s1837_s14, %s1877_s16  ;;  %s42_s18 = sadd.s32 1, %s1833_s13 }
   0x4   : > { %p40_p0 = scmp.eq.s32.totalorder %s39_s17, 0  ;;  %p49_p1 = scmp.ne.s32.totalorder %s1833_s13, %s1829_s12 }
   0x5   : > { %p50_p2 = scmp.eq.s32.totalorder %s1837_s14, 0  ;;  %p1410_p4 = scmp.ge.s32.totalorder %s1837_s14, 2 }
   0x6   : > { %s1886_s19 = scalar_select %p40_p0, %s1833_s13, %s42_s18  }
   0x7   : > { %p51_p3 = por %p50_p2, %p49_p1  ;;  %130 = sbr.rel (%p1410_p4) target bundleno = 84 (0x54), region = 20 }
   0xc   : > { %133 = sbr.rel (!%p51_p3) target bundleno = 84 (0x54), region = 24  ;;  %s135_s20 = sand.u32 (%p51_p3), 1, %s1833_s13  }
   0xd   : > { %s1632_s21 = smul.u32 (%p51_p3), 12, %s1837_s14 }
   0xe   : > { %s1661_s22 = smul.u32 (%p51_p3), 696, %s135_s20 }
   0xf   : > { %s1894_s25 = scalar_lea.vmem (%p51_p3), %s2302_s1, %s1632_s21 }
  0x10   : > { %v155_v0 = vld [vmem:[%s1894_s25] sm:$0xff] (%p51_p3)  ;;  %v157_v1 = vld [vmem:[%s1894_s25 + $0x18] sm:$0xff] (%p51_p3)  ;;  %v159_v2 = vld [vmem:[%s1894_s25 + $0x30] sm:$0xff] (%p51_p3)  ;;  %s1899_s26 = scalar_lea.vmem (%p51_p3), [#allocation2], %s1661_s22 }
  0x11   : > { %156 = vst [vmem:[%s1899_s26] sm:$0xff] %v155_v0  ;;  %158 = vst [vmem:[%s1899_s26 + $0xc] sm:$0xff] %v157_v1  ;;  %v161_v3 = vld [vmem:[%s1894_s25 + $0x48] sm:$0xff]  ;;  %v163_v4 = vld [vmem:[%s1894_s25 + $0x60] sm:$0xff] }
  0x12   : > { %160 = vst [vmem:[%s1899_s26 + $0x18] sm:$0xff] %v159_v2  ;;  %v165_v5 = vld [vmem:[%s1894_s25 + $0x78] sm:$0xff]  ;;  %162 = vst [vmem:[%s1899_s26 + $0x24] sm:$0xff] %v161_v3  ;;  %v167_v6 = vld [vmem:[%s1894_s25 + $0x90] sm:$0xff] }
  0x13   : > { %164 = vst [vmem:[%s1899_s26 + $0x30] sm:$0xff] %v163_v4  ;;  %166 = vst [vmem:[%s1899_s26 + $0x3c] sm:$0xff] %v165_v5  ;;  %v169_v7 = vld [vmem:[%s1894_s25 + $0xa8] sm:$0xff]  ;;  %v171_v8 = vld [vmem:[%s1894_s25 + $0xc0] sm:$0xff] }
  0x14   : > { %168 = vst [vmem:[%s1899_s26 + $0x48] sm:$0xff] %v167_v6  ;;  %170 = vst [vmem:[%s1899_s26 + $0x54] sm:$0xff] %v169_v7  ;;  %v173_v9 = vld [vmem:[%s1894_s25 + $0xd8] sm:$0xff]  ;;  %v175_v10 = vld [vmem:[%s1894_s25 + $0xf0] sm:$0xff] }
  0x15   : > { %172 = vst [vmem:[%s1899_s26 + $0x60] sm:$0xff] %v171_v8  ;;  %v177_v11 = vld [vmem:[%s1894_s25 + $0x108] sm:$0xff]  ;;  %174 = vst [vmem:[%s1899_s26 + $0x6c] sm:$0xff] %v173_v9  ;;  %v179_v12 = vld [vmem:[%s1894_s25 + $0x120] sm:$0xff] }
  0x16   : > { %176 = vst [vmem:[%s1899_s26 + $0x78] sm:$0xff] %v175_v10  ;;  %178 = vst [vmem:[%s1899_s26 + $0x84] sm:$0xff] %v177_v11  ;;  %v181_v13 = vld [vmem:[%s1894_s25 + $0x138] sm:$0xff]  ;;  %v183_v14 = vld [vmem:[%s1894_s25 + $0x150] sm:$0xff] }
  0x17   : > { %180 = vst [vmem:[%s1899_s26 + $0x90] sm:$0xff] %v179_v12  ;;  %182 = vst [vmem:[%s1899_s26 + $0x9c] sm:$0xff] %v181_v13  ;;  %v185_v15 = vld [vmem:[%s1894_s25 + $0x168] sm:$0xff]  ;;  %v187_v16 = vld [vmem:[%s1894_s25 + $0x180] sm:$0xff] }
  0x18   : > { %184 = vst [vmem:[%s1899_s26 + $0xa8] sm:$0xff] %v183_v14  ;;  %v189_v17 = vld [vmem:[%s1894_s25 + $0x198] sm:$0xff]  ;;  %186 = vst [vmem:[%s1899_s26 + $0xb4] sm:$0xff] %v185_v15  ;;  %v191_v18 = vld [vmem:[%s1894_s25 + $0x1b0] sm:$0xff] }
  0x19   : > { %188 = vst [vmem:[%s1899_s26 + $0xc0] sm:$0xff] %v187_v16  ;;  %190 = vst [vmem:[%s1899_s26 + $0xcc] sm:$0xff] %v189_v17  ;;  %v193_v19 = vld [vmem:[%s1894_s25 + $0x1c8] sm:$0xff]  ;;  %v195_v20 = vld [vmem:[%s1894_s25 + $0x1e0] sm:$0xff] }
  0x1a   : > { %192 = vst [vmem:[%s1899_s26 + $0xd8] sm:$0xff] %v191_v18  ;;  %194 = vst [vmem:[%s1899_s26 + $0xe4] sm:$0xff] %v193_v19  ;;  %v197_v21 = vld [vmem:[%s1894_s25 + $0x1f8] sm:$0xff]  ;;  %v199_v22 = vld [vmem:[%s1894_s25 + $0x210] sm:$0xff] }
  0x1b   : > { %196 = vst [vmem:[%s1899_s26 + $0xf0] sm:$0xff] %v195_v20  ;;  %v201_v23 = vld [vmem:[%s1894_s25 + $0x228] sm:$0xff]  ;;  %198 = vst [vmem:[%s1899_s26 + $0xfc] sm:$0xff] %v197_v21  ;;  %v203_v24 = vld [vmem:[%s1894_s25 + $0x240] sm:$0xff] }
  0x1c   : > { %200 = vst [vmem:[%s1899_s26 + $0x108] sm:$0xff] %v199_v22  ;;  %202 = vst [vmem:[%s1899_s26 + $0x114] sm:$0xff] %v201_v23  ;;  %v205_v25 = vld [vmem:[%s1894_s25 + $0x258] sm:$0xff]  ;;  %v207_v26 = vld [vmem:[%s1894_s25 + $0x270] sm:$0xff] }
  0x1d   : > { %204 = vst [vmem:[%s1899_s26 + $0x120] sm:$0xff] %v203_v24  ;;  %206 = vst [vmem:[%s1899_s26 + $0x12c] sm:$0xff] %v205_v25  ;;  %v209_v27 = vld [vmem:[%s1894_s25 + $0x288] sm:$0xff]  ;;  %v211_v28 = vld [vmem:[%s1894_s25 + $0x2a0] sm:$0xff] }
  0x1e   : > { %208 = vst [vmem:[%s1899_s26 + $0x138] sm:$0xff] %v207_v26  ;;  %v213_v29 = vld [vmem:[%s1894_s25 + $0x2b8] sm:$0xff]  ;;  %210 = vst [vmem:[%s1899_s26 + $0x144] sm:$0xff] %v209_v27  ;;  %v215_v30 = vld [vmem:[%s1894_s25 + $0x2d0] sm:$0xff] }
  0x1f   : > { %212 = vst [vmem:[%s1899_s26 + $0x150] sm:$0xff] %v211_v28  ;;  %214 = vst [vmem:[%s1899_s26 + $0x15c] sm:$0xff] %v213_v29  ;;  %v217_v31 = vld [vmem:[%s1894_s25 + $0x2e8] sm:$0xff]  ;;  %v219_v32 = vld [vmem:[%s1894_s25 + $0x300] sm:$0xff] }
  0x20   : > { %216 = vst [vmem:[%s1899_s26 + $0x168] sm:$0xff] %v215_v30  ;;  %218 = vst [vmem:[%s1899_s26 + $0x174] sm:$0xff] %v217_v31  ;;  %v221_v33 = vld [vmem:[%s1894_s25 + $0x318] sm:$0xff]  ;;  %v223_v34 = vld [vmem:[%s1894_s25 + $0x330] sm:$0xff] }
  0x21   : > { %220 = vst [vmem:[%s1899_s26 + $0x180] sm:$0xff] %v219_v32  ;;  %v225_v35 = vld [vmem:[%s1894_s25 + $0x348] sm:$0xff]  ;;  %222 = vst [vmem:[%s1899_s26 + $0x18c] sm:$0xff] %v221_v33  ;;  %v227_v36 = vld [vmem:[%s1894_s25 + $0x360] sm:$0xff] }
  0x22   : > { %224 = vst [vmem:[%s1899_s26 + $0x198] sm:$0xff] %v223_v34  ;;  %226 = vst [vmem:[%s1899_s26 + $0x1a4] sm:$0xff] %v225_v35  ;;  %v229_v37 = vld [vmem:[%s1894_s25 + $0x378] sm:$0xff]  ;;  %v231_v38 = vld [vmem:[%s1894_s25 + $0x390] sm:$0xff] }
  0x23   : > { %228 = vst [vmem:[%s1899_s26 + $0x1b0] sm:$0xff] %v227_v36  ;;  %230 = vst [vmem:[%s1899_s26 + $0x1bc] sm:$0xff] %v229_v37  ;;  %v233_v39 = vld [vmem:[%s1894_s25 + $0x3a8] sm:$0xff]  ;;  %v235_v40 = vld [vmem:[%s1894_s25 + $0x3c0] sm:$0xff] }
  0x24   : > { %232 = vst [vmem:[%s1899_s26 + $0x1c8] sm:$0xff] %v231_v38  ;;  %v237_v41 = vld [vmem:[%s1894_s25 + $0x3d8] sm:$0xff]  ;;  %234 = vst [vmem:[%s1899_s26 + $0x1d4] sm:$0xff] %v233_v39  ;;  %v239_v42 = vld [vmem:[%s1894_s25 + $0x3f0] sm:$0xff] }
  0x25   : > { %236 = vst [vmem:[%s1899_s26 + $0x1e0] sm:$0xff] %v235_v40  ;;  %238 = vst [vmem:[%s1899_s26 + $0x1ec] sm:$0xff] %v237_v41  ;;  %v241_v43 = vld [vmem:[%s1894_s25 + $0x408] sm:$0xff]  ;;  %v243_v44 = vld [vmem:[%s1894_s25 + $0x420] sm:$0xff] }
  0x26   : > { %240 = vst [vmem:[%s1899_s26 + $0x1f8] sm:$0xff] %v239_v42  ;;  %242 = vst [vmem:[%s1899_s26 + $0x204] sm:$0xff] %v241_v43  ;;  %v245_v45 = vld [vmem:[%s1894_s25 + $0x438] sm:$0xff]  ;;  %v247_v46 = vld [vmem:[%s1894_s25 + $0x450] sm:$0xff] }
  0x27   : > { %244 = vst [vmem:[%s1899_s26 + $0x210] sm:$0xff] %v243_v44  ;;  %v249_v47 = vld [vmem:[%s1894_s25 + $0x468] sm:$0xff]  ;;  %246 = vst [vmem:[%s1899_s26 + $0x21c] sm:$0xff] %v245_v45  ;;  %v251_v48 = vld [vmem:[%s1894_s25 + $0x480] sm:$0xff] }
  0x28   : > { %248 = vst [vmem:[%s1899_s26 + $0x228] sm:$0xff] %v247_v46  ;;  %250 = vst [vmem:[%s1899_s26 + $0x234] sm:$0xff] %v249_v47  ;;  %v253_v49 = vld [vmem:[%s1894_s25 + $0x498] sm:$0xff]  ;;  %v255_v50 = vld [vmem:[%s1894_s25 + $0x4b0] sm:$0xff] }
  0x29   : > { %252 = vst [vmem:[%s1899_s26 + $0x240] sm:$0xff] %v251_v48  ;;  %254 = vst [vmem:[%s1899_s26 + $0x24c] sm:$0xff] %v253_v49  ;;  %v257_v51 = vld [vmem:[%s1894_s25 + $0x4c8] sm:$0xff]  ;;  %v259_v52 = vld [vmem:[%s1894_s25 + $0x4e0] sm:$0xff] }
  0x2a   : > { %256 = vst [vmem:[%s1899_s26 + $0x258] sm:$0xff] %v255_v50  ;;  %v261_v53 = vld [vmem:[%s1894_s25 + $0x4f8] sm:$0xff]  ;;  %258 = vst [vmem:[%s1899_s26 + $0x264] sm:$0xff] %v257_v51  ;;  %v263_v54 = vld [vmem:[%s1894_s25 + $0x510] sm:$0xff] }
  0x2b   : > { %260 = vst [vmem:[%s1899_s26 + $0x270] sm:$0xff] %v259_v52  ;;  %262 = vst [vmem:[%s1899_s26 + $0x27c] sm:$0xff] %v261_v53  ;;  %v265_v55 = vld [vmem:[%s1894_s25 + $0x528] sm:$0xff]  ;;  %v267_v56 = vld [vmem:[%s1894_s25 + $0x540] sm:$0xff] }
  0x2c   : > { %264 = vst [vmem:[%s1899_s26 + $0x288] sm:$0xff] %v263_v54  ;;  %266 = vst [vmem:[%s1899_s26 + $0x294] sm:$0xff] %v265_v55  ;;  %v269_v57 = vld [vmem:[%s1894_s25 + $0x558] sm:$0xff]  ;;  %v1412_v58 = vld [vmem:[%s1894_s25 + $0x8] sm:$0xf] }
  0x2d   : > { %268 = vst [vmem:[%s1899_s26 + $0x2a0] sm:$0xff] %v267_v56  ;;  %v1414_v59 = vld [vmem:[%s1894_s25 + $0x20] sm:$0xf]  ;;  %270 = vst [vmem:[%s1899_s26 + $0x2ac] sm:$0xff] %v269_v57  ;;  %v1416_v60 = vld [vmem:[%s1894_s25 + $0x38] sm:$0xf] }
  0x2e   : > { %1413 = vst [vmem:[%s1899_s26 + $0x8] sm:$0xf] %v1412_v58  ;;  %1415 = vst [vmem:[%s1899_s26 + $0x14] sm:$0xf] %v1414_v59  ;;  %v1418_v61 = vld [vmem:[%s1894_s25 + $0x50] sm:$0xf] }
  0x2f   : > { %v1420_v62 = vld [vmem:[%s1894_s25 + $0x68] sm:$0xf]  ;;  %1417 = vst [vmem:[%s1899_s26 + $0x20] sm:$0xf] %v1416_v60  ;;  %1419 = vst [vmem:[%s1899_s26 + $0x2c] sm:$0xf] %v1418_v61 }
  0x30   : > { %1421 = vst [vmem:[%s1899_s26 + $0x38] sm:$0xf] %v1420_v62  ;;  %v1422_v63 = vld [vmem:[%s1894_s25 + $0x80] sm:$0xf]  ;;  %v1424_v0 = vld [vmem:[%s1894_s25 + $0x98] sm:$0xf] }
  0x31   : > { %v1426_v1 = vld [vmem:[%s1894_s25 + $0xb0] sm:$0xf]  ;;  %1423 = vst [vmem:[%s1899_s26 + $0x44] sm:$0xf] %v1422_v63  ;;  %1425 = vst [vmem:[%s1899_s26 + $0x50] sm:$0xf] %v1424_v0 }
  0x32   : > { %1427 = vst [vmem:[%s1899_s26 + $0x5c] sm:$0xf] %v1426_v1  ;;  %v1428_v2 = vld [vmem:[%s1894_s25 + $0xc8] sm:$0xf]  ;;  %v1430_v3 = vld [vmem:[%s1894_s25 + $0xe0] sm:$0xf] }
  0x33   : > { %v1432_v4 = vld [vmem:[%s1894_s25 + $0xf8] sm:$0xf]  ;;  %1429 = vst [vmem:[%s1899_s26 + $0x68] sm:$0xf] %v1428_v2  ;;  %1431 = vst [vmem:[%s1899_s26 + $0x74] sm:$0xf] %v1430_v3 }
  0x34   : > { %1433 = vst [vmem:[%s1899_s26 + $0x80] sm:$0xf] %v1432_v4  ;;  %v1434_v5 = vld [vmem:[%s1894_s25 + $0x110] sm:$0xf]  ;;  %v1436_v6 = vld [vmem:[%s1894_s25 + $0x128] sm:$0xf] }
  0x35   : > { %v1438_v7 = vld [vmem:[%s1894_s25 + $0x140] sm:$0xf]  ;;  %1435 = vst [vmem:[%s1899_s26 + $0x8c] sm:$0xf] %v1434_v5  ;;  %1437 = vst [vmem:[%s1899_s26 + $0x98] sm:$0xf] %v1436_v6 }
  0x36   : > { %1439 = vst [vmem:[%s1899_s26 + $0xa4] sm:$0xf] %v1438_v7  ;;  %v1440_v8 = vld [vmem:[%s1894_s25 + $0x158] sm:$0xf]  ;;  %v1442_v9 = vld [vmem:[%s1894_s25 + $0x170] sm:$0xf] }
  0x37   : > { %v1444_v10 = vld [vmem:[%s1894_s25 + $0x188] sm:$0xf]  ;;  %1441 = vst [vmem:[%s1899_s26 + $0xb0] sm:$0xf] %v1440_v8  ;;  %1443 = vst [vmem:[%s1899_s26 + $0xbc] sm:$0xf] %v1442_v9 }
  0x38   : > { %1445 = vst [vmem:[%s1899_s26 + $0xc8] sm:$0xf] %v1444_v10  ;;  %v1446_v11 = vld [vmem:[%s1894_s25 + $0x1a0] sm:$0xf]  ;;  %v1448_v12 = vld [vmem:[%s1894_s25 + $0x1b8] sm:$0xf] }
  0x39   : > { %v1450_v13 = vld [vmem:[%s1894_s25 + $0x1d0] sm:$0xf]  ;;  %1447 = vst [vmem:[%s1899_s26 + $0xd4] sm:$0xf] %v1446_v11  ;;  %1449 = vst [vmem:[%s1899_s26 + $0xe0] sm:$0xf] %v1448_v12 }
  0x3a   : > { %1451 = vst [vmem:[%s1899_s26 + $0xec] sm:$0xf] %v1450_v13  ;;  %v1452_v14 = vld [vmem:[%s1894_s25 + $0x1e8] sm:$0xf]  ;;  %v1454_v15 = vld [vmem:[%s1894_s25 + $0x200] sm:$0xf] }
  0x3b   : > { %v1456_v16 = vld [vmem:[%s1894_s25 + $0x218] sm:$0xf]  ;;  %1453 = vst [vmem:[%s1899_s26 + $0xf8] sm:$0xf] %v1452_v14  ;;  %1455 = vst [vmem:[%s1899_s26 + $0x104] sm:$0xf] %v1454_v15 }
  0x3c   : > { %1457 = vst [vmem:[%s1899_s26 + $0x110] sm:$0xf] %v1456_v16  ;;  %v1458_v17 = vld [vmem:[%s1894_s25 + $0x230] sm:$0xf]  ;;  %v1460_v18 = vld [vmem:[%s1894_s25 + $0x248] sm:$0xf] }
  0x3d   : > { %v1462_v19 = vld [vmem:[%s1894_s25 + $0x260] sm:$0xf]  ;;  %1459 = vst [vmem:[%s1899_s26 + $0x11c] sm:$0xf] %v1458_v17  ;;  %1461 = vst [vmem:[%s1899_s26 + $0x128] sm:$0xf] %v1460_v18 }
  0x3e   : > { %1463 = vst [vmem:[%s1899_s26 + $0x134] sm:$0xf] %v1462_v19  ;;  %v1464_v20 = vld [vmem:[%s1894_s25 + $0x278] sm:$0xf]  ;;  %v1466_v21 = vld [vmem:[%s1894_s25 + $0x290] sm:$0xf] }
  0x3f   : > { %v1468_v22 = vld [vmem:[%s1894_s25 + $0x2a8] sm:$0xf]  ;;  %1465 = vst [vmem:[%s1899_s26 + $0x140] sm:$0xf] %v1464_v20  ;;  %1467 = vst [vmem:[%s1899_s26 + $0x14c] sm:$0xf] %v1466_v21 }
  0x40   : > { %1469 = vst [vmem:[%s1899_s26 + $0x158] sm:$0xf] %v1468_v22  ;;  %v1470_v23 = vld [vmem:[%s1894_s25 + $0x2c0] sm:$0xf]  ;;  %v1472_v24 = vld [vmem:[%s1894_s25 + $0x2d8] sm:$0xf] }
  0x41   : > { %v1474_v25 = vld [vmem:[%s1894_s25 + $0x2f0] sm:$0xf]  ;;  %1471 = vst [vmem:[%s1899_s26 + $0x164] sm:$0xf] %v1470_v23  ;;  %1473 = vst [vmem:[%s1899_s26 + $0x170] sm:$0xf] %v1472_v24 }
  0x42   : > { %1475 = vst [vmem:[%s1899_s26 + $0x17c] sm:$0xf] %v1474_v25  ;;  %v1476_v26 = vld [vmem:[%s1894_s25 + $0x308] sm:$0xf]  ;;  %v1478_v27 = vld [vmem:[%s1894_s25 + $0x320] sm:$0xf] }
  0x43   : > { %v1480_v28 = vld [vmem:[%s1894_s25 + $0x338] sm:$0xf]  ;;  %1477 = vst [vmem:[%s1899_s26 + $0x188] sm:$0xf] %v1476_v26  ;;  %1479 = vst [vmem:[%s1899_s26 + $0x194] sm:$0xf] %v1478_v27 }
  0x44   : > { %1481 = vst [vmem:[%s1899_s26 + $0x1a0] sm:$0xf] %v1480_v28  ;;  %v1482_v29 = vld [vmem:[%s1894_s25 + $0x350] sm:$0xf]  ;;  %v1484_v30 = vld [vmem:[%s1894_s25 + $0x368] sm:$0xf] }
  0x45   : > { %v1486_v31 = vld [vmem:[%s1894_s25 + $0x380] sm:$0xf]  ;;  %1483 = vst [vmem:[%s1899_s26 + $0x1ac] sm:$0xf] %v1482_v29  ;;  %1485 = vst [vmem:[%s1899_s26 + $0x1b8] sm:$0xf] %v1484_v30 }
  0x46   : > { %1487 = vst [vmem:[%s1899_s26 + $0x1c4] sm:$0xf] %v1486_v31  ;;  %v1488_v32 = vld [vmem:[%s1894_s25 + $0x398] sm:$0xf]  ;;  %v1490_v33 = vld [vmem:[%s1894_s25 + $0x3b0] sm:$0xf] }
  0x47   : > { %v1492_v34 = vld [vmem:[%s1894_s25 + $0x3c8] sm:$0xf]  ;;  %1489 = vst [vmem:[%s1899_s26 + $0x1d0] sm:$0xf] %v1488_v32  ;;  %1491 = vst [vmem:[%s1899_s26 + $0x1dc] sm:$0xf] %v1490_v33 }
  0x48   : > { %1493 = vst [vmem:[%s1899_s26 + $0x1e8] sm:$0xf] %v1492_v34  ;;  %v1494_v35 = vld [vmem:[%s1894_s25 + $0x3e0] sm:$0xf]  ;;  %v1496_v36 = vld [vmem:[%s1894_s25 + $0x3f8] sm:$0xf] }
  0x49   : > { %v1498_v37 = vld [vmem:[%s1894_s25 + $0x410] sm:$0xf]  ;;  %1495 = vst [vmem:[%s1899_s26 + $0x1f4] sm:$0xf] %v1494_v35  ;;  %1497 = vst [vmem:[%s1899_s26 + $0x200] sm:$0xf] %v1496_v36 }
  0x4a   : > { %1499 = vst [vmem:[%s1899_s26 + $0x20c] sm:$0xf] %v1498_v37  ;;  %v1500_v38 = vld [vmem:[%s1894_s25 + $0x428] sm:$0xf]  ;;  %v1502_v39 = vld [vmem:[%s1894_s25 + $0x440] sm:$0xf] }
  0x4b   : > { %v1504_v40 = vld [vmem:[%s1894_s25 + $0x458] sm:$0xf]  ;;  %1501 = vst [vmem:[%s1899_s26 + $0x218] sm:$0xf] %v1500_v38  ;;  %1503 = vst [vmem:[%s1899_s26 + $0x224] sm:$0xf] %v1502_v39 }
  0x4c   : > { %1505 = vst [vmem:[%s1899_s26 + $0x230] sm:$0xf] %v1504_v40  ;;  %v1506_v41 = vld [vmem:[%s1894_s25 + $0x470] sm:$0xf]  ;;  %v1508_v42 = vld [vmem:[%s1894_s25 + $0x488] sm:$0xf] }
  0x4d   : > { %v1510_v43 = vld [vmem:[%s1894_s25 + $0x4a0] sm:$0xf]  ;;  %1507 = vst [vmem:[%s1899_s26 + $0x23c] sm:$0xf] %v1506_v41  ;;  %1509 = vst [vmem:[%s1899_s26 + $0x248] sm:$0xf] %v1508_v42 }
  0x4e   : > { %1511 = vst [vmem:[%s1899_s26 + $0x254] sm:$0xf] %v1510_v43  ;;  %v1512_v44 = vld [vmem:[%s1894_s25 + $0x4b8] sm:$0xf]  ;;  %v1514_v45 = vld [vmem:[%s1894_s25 + $0x4d0] sm:$0xf] }
  0x4f   : > { %v1516_v46 = vld [vmem:[%s1894_s25 + $0x4e8] sm:$0xf]  ;;  %1513 = vst [vmem:[%s1899_s26 + $0x260] sm:$0xf] %v1512_v44  ;;  %1515 = vst [vmem:[%s1899_s26 + $0x26c] sm:$0xf] %v1514_v45 }
  0x50   : > { %1517 = vst [vmem:[%s1899_s26 + $0x278] sm:$0xf] %v1516_v46  ;;  %v1518_v47 = vld [vmem:[%s1894_s25 + $0x500] sm:$0xf]  ;;  %v1520_v48 = vld [vmem:[%s1894_s25 + $0x518] sm:$0xf] }
  0x51   : > { %v1522_v49 = vld [vmem:[%s1894_s25 + $0x530] sm:$0xf]  ;;  %1519 = vst [vmem:[%s1899_s26 + $0x284] sm:$0xf] %v1518_v47  ;;  %1521 = vst [vmem:[%s1899_s26 + $0x290] sm:$0xf] %v1520_v48 }
  0x52   : > { %1523 = vst [vmem:[%s1899_s26 + $0x29c] sm:$0xf] %v1522_v49  ;;  %v1524_v50 = vld [vmem:[%s1894_s25 + $0x548] sm:$0xf]  ;;  %v1526_v51 = vld [vmem:[%s1894_s25 + $0x560] sm:$0xf] }
  0x53   : > { %1525 = vst [vmem:[%s1899_s26 + $0x2a8] sm:$0xf] %v1524_v50  ;;  %1527 = vst [vmem:[%s1899_s26 + $0x2b4] sm:$0xf] %v1526_v51 }
  0x54 PF: > { %p1528_p5 = scmp.ge.s32.totalorder %s1837_s14, 1  ;;  %p399_p6 = scmp.lt.s32.totalorder %s1837_s14, 3 }
  0x56   : > { %p400_p7 = pnand %p1528_p5, %p399_p6 }
  0x57   : > { %s406_s27 = sand.u32 (!%p400_p7), 1, %s1829_s12   ;;  %p435_p8 = scmp.lt.s32.totalorder (!%p400_p7), %s1407_s15, 1 }
  0x58   : > { %403 = sbr.rel (%p400_p7) target bundleno = 559 (0x22f), region = 50 }
  0x59   : > { %s1662_s28 = smul.u32 (!%p400_p7), 696, %s406_s27 }
  0x5b   : > { %s2144_s6 = scalar_lea.vmem (!%p400_p7), [#allocation2], %s1662_s28 }
  0x5d   : > { %v2136_v52 = vld [vmem:[%s2301_s0 + $0x4] ss:$16 sps:$4 sm:$0xff]   ;;  %vm1064_vm0 = vcmask 654336   ;;  %v2141_v53 = vld [vmem:[%s2301_s0 + $0xc] ss:$16 sps:$4 sm:$0xff]   ;;  %s2309_s15 = smov (!%p435_p8, %s1407_s15), 1 }
  0x5e   : > { %1103 = vmatprep.mubr.bf16.mxu0 %v2136_v52  ;;  %v1689_v54 = vld [vmem:[%s2144_s6 + $0xac] ss:$12 sps:$4 sm:$0xff]   ;;  %1626 = vmatprep.mubr.msk.bf16.mxu1 %vm1064_vm0, %v2141_v53  ;;  %v1691_v55 = vld [vmem:[%s2144_s6 + $0xa8] ss:$12 sps:$4 sm:$0xff]   ;;  %v1694_v57 = vld [vmem:[%s2144_s6 + $0x90] ss:$12 sps:$4 sm:$0xff]  }
  0x5f   : > { %1071 = vmatprep.subr.bf16.mxu0 %v1689_v54  ;;  %v1692_v56 = vld [vmem:[%s2144_s6 + $0x94] ss:$12 sps:$4 sm:$0xff]   ;;  %v1695_v58 = vld [vmem:[%s2144_s6 + $0x7c] ss:$12 sps:$4 sm:$0xff]   ;;  %v1700_v59 = vld [vmem:[%s2144_s6 + $0x22c] ss:$12 sps:$4 sm:$0xff]  }
  0x60   : > { %1072 = vmatpush1.bf16.msra.mxu0 %v1691_v55  ;;  %v1703_v60 = vld [vmem:[%s2144_s6 + $0x228] ss:$12 sps:$4 sm:$0xff]   ;;  %v1697_v61 = vld [vmem:[%s2144_s6 + $0x78] ss:$12 sps:$4 sm:$0xff]   ;;  %1122 = vmatprep.subr.bf16.mxu1 %v1700_v59  ;;  %v1709_v0 = vld [vmem:[%s2144_s6 + $0x210] ss:$12 sps:$4 sm:$0xff]  }
  0x61   : > { %1073 = vmatprep.subr.bf16.mxu0 %v1692_v56  ;;  %v1698_v62 = vld [vmem:[%s2144_s6 + $0x64] ss:$12 sps:$4 sm:$0xff]   ;;  %1123 = vmatpush1.bf16.msra.mxu1 %v1703_v60  ;;  %v1706_v63 = vld [vmem:[%s2144_s6 + $0x214] ss:$12 sps:$4 sm:$0xff]   ;;  %v1704_v2 = vld [vmem:[%s2144_s6 + $0x4c] ss:$12 sps:$4 sm:$0xff]  }
  0x62   : > { %1124 = vmatprep.subr.bf16.mxu1 %v1706_v63  ;;  %v1702_v1 = vld [vmem:[%s2144_s6 + $0x60] ss:$12 sps:$4 sm:$0xff]   ;;  %v1712_v3 = vld [vmem:[%s2144_s6 + $0x1fc] ss:$12 sps:$4 sm:$0xff]   ;;  %v1715_v4 = vld [vmem:[%s2144_s6 + $0x1f8] ss:$12 sps:$4 sm:$0xff]  }
  0x63   : > { %v1718_v5 = vld [vmem:[%s2144_s6 + $0x1e4] ss:$12 sps:$4 sm:$0xff]   ;;  %v1708_v6 = vld [vmem:[%s2144_s6 + $0x48] ss:$12 sps:$4 sm:$0xff]   ;;  %v1721_v8 = vld [vmem:[%s2144_s6 + $0x1e0] ss:$12 sps:$4 sm:$0xff]  }
  0x64   : > { %1074 = vmatpush1.bf16.msra.mxu0 %v1694_v57  ;;  %v1710_v7 = vld [vmem:[%s2144_s6 + $0x34] ss:$12 sps:$4 sm:$0xff]   ;;  %v1724_v9 = vld [vmem:[%s2144_s6 + $0x1cc] ss:$12 sps:$4 sm:$0xff]   ;;  %v1714_v10 = vld [vmem:[%s2144_s6 + $0x30] ss:$12 sps:$4 sm:$0xff]  }
  0x65   : > { %1075 = vmatprep.subr.bf16.mxu0 %v1695_v58  ;;  %1125 = vmatpush1.bf16.msra.mxu1 %v1709_v0  ;;  %v1716_v11 = vld [vmem:[%s2144_s6 + $0x1c] ss:$12 sps:$4 sm:$0xff]   ;;  %v1730_v13 = vld [vmem:[%s2144_s6 + $0x1b4] ss:$12 sps:$4 sm:$0xff]   ;;  %v1720_v14 = vld [vmem:[%s2144_s6 + $0x18] ss:$12 sps:$4 sm:$0xff]  }
  0x66   : > { %1126 = vmatprep.subr.bf16.mxu1 %v1712_v3  ;;  %v1727_v12 = vld [vmem:[%s2144_s6 + $0x1c8] ss:$12 sps:$4 sm:$0xff]   ;;  %v1722_v15 = vld [vmem:[%s2144_s6 + $0x4] ss:$12 sps:$4 sm:$0xff]   ;;  %v1726_v18 = vld [vmem:[%s2144_s6] ss:$12 sps:$4 sm:$0xff]  }
  0x67   : > { %v1733_v16 = vld [vmem:[%s2144_s6 + $0x1b0] ss:$12 sps:$4 sm:$0xff]   ;;  %v1728_v19 = vld [vmem:[%s2144_s6 + $0x16c] ss:$12 sps:$4 sm:$0xff]   ;;  %v1732_v22 = vld [vmem:[%s2144_s6 + $0x168] ss:$12 sps:$4 sm:$0xff]  }
  0x68   : > { %1076 = vmatpush1.bf16.msra.mxu0 %v1697_v61  ;;  %v1736_v17 = vld [vmem:[%s2144_s6 + $0x19c] ss:$12 sps:$4 sm:$0xff]   ;;  %v1739_v20 = vld [vmem:[%s2144_s6 + $0x198] ss:$12 sps:$4 sm:$0xff]   ;;  %v1734_v23 = vld [vmem:[%s2144_s6 + $0x154] ss:$12 sps:$4 sm:$0xff]  }
  0x69   : > { %1077 = vmatprep.subr.bf16.mxu0 %v1698_v62  ;;  %1127 = vmatpush1.bf16.msra.mxu1 %v1715_v4  ;;  %v1742_v21 = vld [vmem:[%s2144_s6 + $0x184] ss:$12 sps:$4 sm:$0xff]   ;;  %v1745_v24 = vld [vmem:[%s2144_s6 + $0x180] ss:$12 sps:$4 sm:$0xff]   ;;  %v1740_v27 = vld [vmem:[%s2144_s6 + $0x13c] ss:$12 sps:$4 sm:$0xff]  }
  0x6a   : > { %1128 = vmatprep.subr.bf16.mxu1 %v1718_v5  ;;  %v1748_v25 = vld [vmem:[%s2144_s6 + $0x2a4] ss:$12 sps:$4 sm:$0xff]   ;;  %v1751_v28 = vld [vmem:[%s2144_s6 + $0x2a0] ss:$12 sps:$4 sm:$0xff]   ;;  %v1757_v32 = vld [vmem:[%s2144_s6 + $0x288] ss:$12 sps:$4 sm:$0xff]  }
  0x6b   : > { %v1738_v26 = vld [vmem:[%s2144_s6 + $0x150] ss:$12 sps:$4 sm:$0xff]   ;;  %v1754_v29 = vld [vmem:[%s2144_s6 + $0x28c] ss:$12 sps:$4 sm:$0xff]   ;;  %v1760_v33 = vld [vmem:[%s2144_s6 + $0x274] ss:$12 sps:$4 sm:$0xff]  }
  0x6c   : > { %1078 = vmatpush1.bf16.msra.mxu0 %v1702_v1  ;;  %v1744_v30 = vld [vmem:[%s2144_s6 + $0x138] ss:$12 sps:$4 sm:$0xff]   ;;  %v1750_v34 = vld [vmem:[%s2144_s6 + $0x120] ss:$12 sps:$4 sm:$0xff]   ;;  %v1763_v36 = vld [vmem:[%s2144_s6 + $0x270] ss:$12 sps:$4 sm:$0xff]  }
  0x6d   : > { %1079 = vmatprep.subr.bf16.mxu0 %v1704_v2  ;;  %1129 = vmatpush1.bf16.msra.mxu1 %v1721_v8  ;;  %v1746_v31 = vld [vmem:[%s2144_s6 + $0x124] ss:$12 sps:$4 sm:$0xff]   ;;  %v1752_v35 = vld [vmem:[%s2144_s6 + $0x10c] ss:$12 sps:$4 sm:$0xff]   ;;  %v1766_v37 = vld [vmem:[%s2144_s6 + $0x25c] ss:$12 sps:$4 sm:$0xff]  }
  0x6e   : > { %1130 = vmatprep.subr.bf16.mxu1 %v1724_v9  ;;  %v1756_v38 = vld [vmem:[%s2144_s6 + $0x108] ss:$12 sps:$4 sm:$0xff]   ;;  %v1769_v40 = vld [vmem:[%s2144_s6 + $0x258] ss:$12 sps:$4 sm:$0xff]   ;;  %v1762_v42 = vld [vmem:[%s2144_s6 + $0xf0] ss:$12 sps:$4 sm:$0xff]  }
  0x6f   : > { %v1758_v39 = vld [vmem:[%s2144_s6 + $0xf4] ss:$12 sps:$4 sm:$0xff]   ;;  %v1772_v41 = vld [vmem:[%s2144_s6 + $0x244] ss:$12 sps:$4 sm:$0xff]   ;;  %v1764_v43 = vld [vmem:[%s2144_s6 + $0xdc] ss:$12 sps:$4 sm:$0xff]  }
  0x70   : > { %1080 = vmatpush1.bf16.msra.mxu0 %v1708_v6  ;;  %v1775_v44 = vld [vmem:[%s2144_s6 + $0x240] ss:$12 sps:$4 sm:$0xff]   ;;  %v1785_v47 = vld [vmem:[%s2144_s6 + $0x170] ss:$12 sps:$4 sm:$0xff]   ;;  %v1768_v48 = vld [vmem:[%s2144_s6 + $0xd8] ss:$12 sps:$4 sm:$0xff]  }
  0x71   : > { %1081 = vmatprep.subr.bf16.mxu0 %v1710_v7  ;;  %1131 = vmatpush1.bf16.msra.mxu1 %v1727_v12  ;;  %v451_v45 = vld [vmem:[%s2301_s0 + $0x28] sm:$0xff]  ;;  %v1788_v51 = vld [vmem:[%s2144_s6 + $0x158] ss:$12 sps:$4 sm:$0xff]   ;;  %v1839_v62 = vmov 0   ;;  %s1663_s20 = smul.u32 24, %s2309_s15  ;;  %vm1281_vm1 = vcmask 7168  }
  0x72   : > { %1132 = vmatprep.subr.bf16.mxu1 %v1730_v13  ;;  %v2209_v46 = vld [vmem:[%s2301_s0 + $0x8] ss:$16 sps:$4 sm:$0xff]   ;;  %v2216_v54 = vcombine.high %v451_v45, %v451_v45  ;;  %v2223_v56 = vld [vmem:[%s2301_s0] ss:$16 sps:$4 sm:$0xff]   ;;  %v2233_v61 = vcombine.low %v451_v45, %v451_v45 }
  0x73   : > { %v1770_v49 = vld [vmem:[%s2144_s6 + $0xc4] ss:$12 sps:$4 sm:$0xff]   ;;  %v1774_v55 = vld [vmem:[%s2144_s6 + $0xc0] ss:$12 sps:$4 sm:$0xff]   ;;  %v1794_v0 = vld [vmem:[%s2144_s6 + $0x128] ss:$12 sps:$4 sm:$0xff]   ;;  %s439_s23 = scalar_lea.vmem %s2303_s2, %s1663_s20  ;;  %s444_s26 = scalar_lea.vmem %s2304_s3, %s1663_s20 }
  0x74   : > { %1082 = vmatpush1.bf16.msra.mxu0 %v1714_v10  ;;  %v1786_v50 = vld [vmem:[%s2144_s6 + $0xb0] ss:$12 sps:$4 sm:$0xff]   ;;  %v1789_v57 = vld [vmem:[%s2144_s6 + $0x98] ss:$12 sps:$4 sm:$0xff]   ;;  %v1791_v58 = vld [vmem:[%s2144_s6 + $0x140] ss:$12 sps:$4 sm:$0xff]  }
  0x75   : > { %1083 = vmatprep.subr.bf16.mxu0 %v1716_v11  ;;  %1133 = vmatpush1.bf16.msra.mxu1 %v1733_v16  ;;  %v450_v59 = vld [vmem:[%s2301_s0 + $0x20] sm:$0xff]  ;;  %v1782_v60 = vld [vmem:[%s2144_s6 + $0x230] ss:$12 sps:$4 sm:$0xff]  }
  0x76   : > { %1134 = vmatprep.subr.bf16.mxu1 %v1736_v17  ;;  %v1792_v63 = vld [vmem:[%s2144_s6 + $0x80] ss:$12 sps:$4 sm:$0xff]   ;;  %v1536_v1 = vcombine.high %v450_v59, %v450_v59  ;;  %v1783_v2 = vld [vmem:[%s2144_s6 + $0x218] ss:$12 sps:$4 sm:$0xff]   ;;  %v1795_v3 = vld [vmem:[%s2144_s6 + $0x68] ss:$12 sps:$4 sm:$0xff]   ;;  %v1535_v5 = vcombine.low %v450_v59, %v450_v59 }
  0x77   : > { %v1797_v4 = vld [vmem:[%s2144_s6 + $0x110] ss:$12 sps:$4 sm:$0xff]   ;;  %v1784_v6 = vld [vmem:[%s2144_s6 + $0x200] ss:$12 sps:$4 sm:$0xff]   ;;  %v1800_v8 = vld [vmem:[%s2144_s6 + $0xf8] ss:$12 sps:$4 sm:$0xff]  }
  0x78   : > { %1084 = vmatpush1.bf16.msra.mxu0 %v1720_v14  ;;  %v1798_v7 = vld [vmem:[%s2144_s6 + $0x50] ss:$12 sps:$4 sm:$0xff]   ;;  %v1787_v9 = vld [vmem:[%s2144_s6 + $0x1e8] ss:$12 sps:$4 sm:$0xff]   ;;  %v1805_v10 = vld [vmem:[%s2144_s6 + $0xe0] ss:$12 sps:$4 sm:$0xff]  }
  0x79   : > { %1085 = vmatprep.subr.bf16.mxu0 %v1722_v15  ;;  %1135 = vmatpush1.bf16.msra.mxu1 %v1739_v20  ;;  %v1790_v11 = vld [vmem:[%s2144_s6 + $0x1d0] ss:$12 sps:$4 sm:$0xff]   ;;  %v1806_v12 = vld [vmem:[%s2144_s6 + $0x20] ss:$12 sps:$4 sm:$0xff]   ;;  %v1810_v13 = vld [vmem:[%s2144_s6 + $0xc8] ss:$12 sps:$4 sm:$0xff]  }
  0x7a   : > { %1136 = vmatprep.subr.bf16.mxu1 %v1742_v21  ;;  %v1811_v14 = vld [vmem:[%s2144_s6 + $0x8] ss:$12 sps:$4 sm:$0xff]   ;;  %v1796_v15 = vld [vmem:[%s2144_s6 + $0x1a0] ss:$12 sps:$4 sm:$0xff]  }
  0x7b   : > { %v1799_v16 = vld [vmem:[%s2144_s6 + $0x188] ss:$12 sps:$4 sm:$0xff]   ;;  %v1813_v20 = vld [vmem:[%s2144_s6 + $0x260] ss:$12 sps:$4 sm:$0xff]  }
  0x7c   : > { %1086 = vmatpush1.bf16.msra.mxu0 %v1726_v18  ;;  %v1803_v17 = vld [vmem:[%s2144_s6 + $0x2a8] ss:$12 sps:$4 sm:$0xff]   ;;  %v1808_v18 = vld [vmem:[%s2144_s6 + $0x290] ss:$12 sps:$4 sm:$0xff]  }
  0x7d   : > { %1087 = vmatprep.subr.bf16.mxu0 %v1728_v19  ;;  %1137 = vmatpush1.bf16.msra.mxu1 %v1745_v24  ;;  %v1812_v19 = vld [vmem:[%s2144_s6 + $0x278] ss:$12 sps:$4 sm:$0xff]   ;;  %v1814_v21 = vld [vmem:[%s2144_s6 + $0x248] ss:$12 sps:$4 sm:$0xff]  }
  0x7e   : > { %1144 = vmatprep.subr.bf16.mxu1 %v1748_v25 }
  0x80   : > { %1088 = vmatpush2.bf16.msra.mxu0 %v1732_v22 }
  0x81   : > { %1089 = vmatprep.subr.bf16.mxu0 %v1734_v23  ;;  %1145 = vmatpush2.bf16.msra.mxu1 %v1751_v28 }
  0x82   : > { %1146 = vmatprep.subr.bf16.mxu1 %v1754_v29 }
  0x84   : > { %1090 = vmatpush2.bf16.msra.mxu0 %v1738_v26 }
  0x85   : > { %1091 = vmatprep.subr.bf16.mxu0 %v1740_v27  ;;  %1147 = vmatpush2.bf16.msra.mxu1 %v1757_v32 }
  0x86   : > { %1148 = vmatprep.subr.bf16.mxu1 %v1760_v33 }
  0x88   : > { %1092 = vmatpush2.bf16.msra.mxu0 %v1744_v30 }
  0x89   : > { %1093 = vmatprep.subr.bf16.mxu0 %v1746_v31  ;;  %1149 = vmatpush2.bf16.msra.mxu1 %v1763_v36 }
  0x8a   : > { %1150 = vmatprep.subr.bf16.mxu1 %v1766_v37 }
  0x8c   : > { %1094 = vmatpush2.bf16.msra.mxu0 %v1750_v34 }
  0x8d   : > { %1095 = vmatprep.subr.bf16.mxu0 %v1752_v35  ;;  %1151 = vmatpush2.bf16.msra.mxu1 %v1769_v40 }
  0x8e   : > { %1152 = vmatprep.subr.bf16.mxu1 %v1772_v41 }
  0x90   : > { %1096 = vmatpush2.bf16.msra.mxu0 %v1756_v38 }
  0x91   : > { %1097 = vmatprep.subr.bf16.mxu0 %v1758_v39  ;;  %1153 = vmatpush2.bf16.msra.mxu1 %v1775_v44 }
  0x92   : > { %1633 = vmatprep.subr.bf16.mxu1 %v1785_v47 }
  0x94   : > { %1098 = vmatpush2.bf16.msra.mxu0 %v1762_v42  ;;  %1155 = vmatmul.mubr.bf16.vlgmr.msra.gmra.mxu1 %v2209_v46 }
  0x95   : > { %1099 = vmatprep.subr.bf16.mxu0 %v1764_v43  ;;  %1634 = vmatpush3.bf16.msra.mxu1 %v1786_v50 }
  0x96   : > { %1635 = vmatprep.subr.bf16.mxu1 %v1788_v51  ;;  %1627 = vmatprep.mubr.msk.bf16.mxu1 %vm1064_vm0, %v2216_v54 }
  0x98   : > { %1100 = vmatpush2.bf16.msra.mxu0 %v1768_v48 }
  0x99   : > { %1101 = vmatprep.subr.bf16.mxu0 %v1770_v49  ;;  %1636 = vmatpush3.bf16.msra.mxu1 %v1789_v57 }
  0x9a   : > { %1637 = vmatprep.subr.bf16.mxu1 %v1791_v58 }
  0x9c   : > { %1102 = vmatpush2.bf16.msra.mxu0 %v1774_v55  ;;  %1165 = vmatmul.mubr.bf16.gmra.mxu1 %v2233_v61 }
  0x9d   : > { %1221 = vmatprep.subr.bf16.mxu0 %v1839_v62  ;;  %1638 = vmatpush3.bf16.msra.mxu1 %v1792_v63 }
  0x9e   : > { %1639 = vmatprep.subr.bf16.mxu1 %v1794_v0  ;;  %1205 = vmatprep.mubr.bf16.mxu1 %v2136_v52  ;;  %v1801_v52 = vld [vmem:[%s2144_s6 + $0x38] ss:$12 sps:$4 sm:$0xff]  }
  0x9f   : > { %1104 = vmatmul.mubr.bf16.vlgmr.msra.gmra.mxu0 %v2223_v56 }
  0xa0   : > { %1222 = vmatpush1.bf16.msra.mxu0 %v1782_v60  ;;  %1113 = vmatprep.mubr.bf16.mxu0 %v1536_v1 }
  0xa1   : > { %1223 = vmatprep.subr.bf16.mxu0 %v1839_v62  ;;  %1640 = vmatpush3.bf16.msra.mxu1 %v1795_v3 }
  0xa2   : > { %1641 = vmatprep.subr.bf16.mxu1 %v1797_v4 }
  0xa4   : > { %1224 = vmatpush1.bf16.msra.mxu0 %v1783_v2 }
  0xa5   : > { %1225 = vmatprep.subr.bf16.mxu0 %v1839_v62  ;;  %1642 = vmatpush3.bf16.msra.mxu1 %v1798_v7 }
  0xa6   : > { %1643 = vmatprep.subr.bf16.mxu1 %v1800_v8 }
  0xa7   : > { %1114 = vmatmul.mubr.bf16.gmra.mxu0 %v1535_v5 }
  0xa8   : > { %1226 = vmatpush1.bf16.msra.mxu0 %v1784_v6  ;;  %1628 = vmatprep.mubr.msk.bf16.mxu0 %vm1064_vm0, %v2141_v53  ;;  %v1793_v53 = vld [vmem:[%s2144_s6 + $0x1b8] ss:$12 sps:$4 sm:$0xff]  }
  0xa9   : > { %1227 = vmatprep.subr.bf16.mxu0 %v1839_v62  ;;  %1644 = vmatpush3.bf16.msra.mxu1 %v1801_v52 }
  0xaa   : > { %1645 = vmatprep.subr.bf16.mxu1 %v1805_v10 }
  0xac   : > { %1228 = vmatpush1.bf16.msra.mxu0 %v1787_v9 }
  0xad   : > { %1229 = vmatprep.subr.bf16.mxu0 %v1839_v62  ;;  %1646 = vmatpush3.bf16.msra.mxu1 %v1806_v12 }
  0xae   : > { %1647 = vmatprep.subr.bf16.mxu1 %v1810_v13 }
  0xb0   : > { %1230 = vmatpush1.bf16.msra.mxu0 %v1790_v11 }
  0xb1   : > { %1231 = vmatprep.subr.bf16.mxu0 %v1839_v62  ;;  %1648 = vmatpush3.bf16.msra.mxu1 %v1811_v14 }
  0xb4   : > { %1232 = vmatpush1.bf16.msra.mxu0 %v1793_v53  ;;  %1206 = vmatmul.mubr.bf16.vlgmr.msra.gmra.mxu1 %v2223_v56 }
  0xb5   : > { %1233 = vmatprep.subr.bf16.mxu0 %v1839_v62  ;;  %1213 = vmatprep.mubr.bf16.mxu1 %v1536_v1 }
  0xb8   : > { %1234 = vmatpush1.bf16.msra.mxu0 %v1796_v15 }
  0xb9   : > { %1235 = vmatprep.subr.bf16.mxu0 %v1839_v62 }
  0xbc   : > { %1236 = vmatpush1.bf16.msra.mxu0 %v1799_v16  ;;  %1214 = vmatmul.mubr.bf16.gmra.mxu1 %v1535_v5 }
  0xbd   : > { %1243 = vmatprep.subr.bf16.mxu0 %v1839_v62 }
  0xc0   : > { %1244 = vmatpush2.bf16.msra.mxu0 %v1803_v17 }
  0xc1   : > { %1245 = vmatprep.subr.bf16.mxu0 %v1839_v62 }
  0xc4   : > { %1246 = vmatpush2.bf16.msra.mxu0 %v1808_v18 }
  0xc5   : > { %1247 = vmatprep.subr.bf16.mxu0 %v1839_v62 }
  0xc8   : > { %1248 = vmatpush2.bf16.msra.mxu0 %v1812_v19 }
  0xc9   : > { %1249 = vmatprep.subr.bf16.mxu0 %v1839_v62 }
  0xcc   : > { %1250 = vmatpush2.bf16.msra.mxu0 %v1813_v20 }
  0xcd   : > { %1251 = vmatprep.subr.bf16.mxu0 %v1839_v62 }
  0xd0   : > { %1252 = vmatpush2.bf16.msra.mxu0 %v1814_v21 }
  0xd3   : > { %1254 = vmatmul.mubr.bf16.vlgmr.msra.gmra.mxu0 %v2209_v46 }
  0xd4   : > { %1629 = vmatprep.mubr.msk.bf16.mxu0 %vm1064_vm0, %v2216_v54 }
  0xdb   : > { %1262 = vmatmul.mubr.bf16.gmra.mxu0 %v2233_v61 }
 0x154   : > { %v1156_v22 = vpop.f32.mrf.mxu1 }
 0x156   : > { %v1158_v23 = vpop.f32.mrf.mxu1 }
 0x158   : > { %v1160_v24 = vpop.f32.mrf.mxu1 }
 0x15a   : > { %v1162_v25 = vpop.f32.mrf.mxu1 }
 0x15c   : > { %v1166_v27 = vpop.f32.mrf.mxu1 }
 0x15e   : > { %v1168_v29 = vpop.f32.mrf.mxu1 }
 0x15f   : > { %v1105_v26 = vpop.f32.mrf.mxu0 }
 0x160   : > { %v1170_v31 = vpop.f32.mrf.mxu1  ;;  %v1157_v46 = vadd.f32 %v1156_v22, %v1105_v26 }
 0x161   : > { %v1107_v28 = vpop.f32.mrf.mxu0 }
 0x162   : > { %v1171_v33 = vpop.f32.mrf.mxu1  ;;  %v1159_v47 = vadd.f32 %v1158_v23, %v1107_v28  ;;  %v1285_v48 = vmul.f32 %v1157_v46, %v1157_v46 }
 0x163   : > { %v1109_v30 = vpop.f32.mrf.mxu0 }
 0x164   : > { %v1286_v49 = vmul.f32 %v1159_v47, %v1159_v47  ;;  %v1269_v56 = vadd.f32 %v1159_v47, %v1157_v46  ;;  %v1161_v57 = vadd.f32 %v1160_v24, %v1109_v30 }
 0x165   : > { %v1111_v32 = vpop.f32.mrf.mxu0 }
 0x166   : > { %v1163_v51 = vadd.f32 %v1162_v25, %v1111_v32  ;;  %v1294_v62 = vadd.f32 %v1286_v49, %v1285_v48  ;;  %v1288_v7 = vmul.f32 %v1161_v57, %v1161_v57 }
 0x167   : > { %v1115_v34 = vpop.f32.mrf.mxu0 }
 0x168   : > { %v1273_v63 = vadd.f32 %v1163_v51, %v1161_v57  ;;  %v1167_v0 = vadd.f32 %v1166_v27, %v1115_v34  ;;  %v1289_v2 = vmul.f32 %v1163_v51, %v1163_v51 }
 0x169   : > { %v1117_v35 = vpop.f32.mrf.mxu0 }
 0x16a   : > { %v1169_v3 = vadd.f32 %v1168_v29, %v1117_v35  ;;  %v1291_v10 = vmul.f32 %v1167_v0, %v1167_v0  ;;  %v1298_v14 = vadd.f32 %v1289_v2, %v1288_v7 }
 0x16b   : > { %v1119_v36 = vpop.f32.mrf.mxu0 }
 0x16c   : > { %v1277_v12 = vadd.f32 %v1169_v3, %v1167_v0  ;;  %v1292_v13 = vmul.f32 %v1169_v3, %v1169_v3 }
 0x16d   : > { %v1120_v37 = vpop.f32.mrf.mxu0 }
 0x16e   : > { %v1302_v20 = vadd.f32 %v1292_v13, %v1291_v10 }
 0x174   : > { %v1649_v38 = vpop.f32.mrf.mxu1 }
 0x176   : > { %v1650_v39 = vpop.f32.mrf.mxu1 }
 0x177   : > { %v1651_v50 = vadd.f32 %v1650_v39, %v1649_v38 }
 0x178   : > { %v1652_v40 = vpop.f32.mrf.mxu1 }
 0x17a   : > { %v1653_v41 = vpop.f32.mrf.mxu1 }
 0x17b   : > { %v1654_v59 = vadd.f32 %v1653_v41, %v1652_v40 }
 0x17c   : > { %v1655_v42 = vpop.f32.mrf.mxu1 }
 0x17e   : > { %v1656_v43 = vpop.f32.mrf.mxu1 }
 0x17f   : > { %v1657_v8 = vadd.f32 %v1656_v43, %v1655_v42 }
 0x180   : > { %v1658_v44 = vpop.f32.mrf.mxu1 }
 0x182   : > { %v1659_v45 = vpop.f32.mrf.mxu1 }
 0x193   : > { %v1255_v54 = vpop.f32.mrf.mxu0 }
 0x194   : > { %v1256_v55 = vadd.f32 %v1651_v50, %v1255_v54 }
 0x195   : > { %v1257_v58 = vpop.f32.mrf.mxu0 }
 0x196   : > { %v1270_v60 = vadd.f32 %v1269_v56, %v1256_v55  ;;  %v1287_v61 = vmul.f32 %v1256_v55, %v1256_v55 }
 0x197   : > { %v1258_v1 = vpop.f32.mrf.mxu0 }
 0x198   : > { %v1259_v4 = vadd.f32 %v1654_v59, %v1258_v1  ;;  %1271 = vadd.xlane.f32.xlu0 %v1270_v60  ;;  %v1295_v5 = vadd.f32 %v1294_v62, %v1287_v61 }
 0x199   : > { %v1260_v6 = vpop.f32.mrf.mxu0 }
 0x19a   : > { %v1290_v9 = vmul.f32 %v1259_v4, %v1259_v4  ;;  %1296 = vadd.xlane.f32.xlu1 %v1295_v5  ;;  %v1274_v52 = vadd.f32 %v1273_v63, %v1259_v4 }
 0x19b   : > { %v1263_v11 = vpop.f32.mrf.mxu0 }
 0x19c   : > { %v1264_v53 = vadd.f32 %v1657_v8, %v1263_v11  ;;  %1275 = vadd.xlane.f32.xlu0 %v1274_v52  ;;  %v1299_v18 = vadd.f32 %v1298_v14, %v1290_v9 }
 0x19d   : > { %v1265_v15 = vpop.f32.mrf.mxu0 }
 0x19e   : > { %v1293_v16 = vmul.f32 %v1264_v53, %v1264_v53  ;;  %v1278_v17 = vadd.f32 %v1277_v12, %v1264_v53 }
 0x19f   : > { %v1266_v19 = vpop.f32.mrf.mxu0 }
 0x1a0   : > { %1279 = vadd.xlane.f32.xlu1 %v1278_v17  ;;  %1300 = vadd.xlane.f32.xlu0 %v1299_v18  ;;  %v1303_v22 = vadd.f32 %v1302_v20, %v1293_v16 }
 0x1a1   : > { %v1267_v21 = vpop.f32.mrf.mxu0 }
 0x1a4   : > { %1304 = vadd.xlane.f32.xlu1 %v1303_v22 }
 0x221   : > { %v1272_v23 = vpop.xlane.xlu0 %1271 }
 0x222   : > { %1282 = vst.msk [vmem:[%s439_s23] sm:$0xff] %vm1281_vm1, %v1272_v23 }
 0x223   : > { %v1297_v24 = vpop.xlane.xlu1 %1296 }
 0x224   : > { %1306 = vst.msk [vmem:[%s444_s26] sm:$0xff] %vm1281_vm1, %v1297_v24 }
 0x225   : > { %v1276_v25 = vpop.xlane.xlu0 %1275 }
 0x226   : > { %1283 = vst.msk [vmem:[%s439_s23 + $0x8] sm:$0xff] %vm1281_vm1, %v1276_v25 }
 0x229   : > { %v1280_v26 = vpop.xlane.xlu1 %1279  ;;  %v1301_v27 = vpop.xlane.xlu0 %1300 }
 0x22a   : > { %1284 = vst.msk [vmem:[%s439_s23 + $0x10] sm:$0xff] %vm1281_vm1, %v1280_v26  ;;  %1307 = vst.msk [vmem:[%s444_s26 + $0x8] sm:$0xff] %vm1281_vm1, %v1301_v27 }
 0x22d   : > { %v1305_v28 = vpop.xlane.xlu1 %1304 }
 0x22e   : > { %1308 = vst.msk [vmem:[%s444_s26 + $0x10] sm:$0xff] %vm1281_vm1, %v1305_v28 }
 0x22f PF: > { %p11_p9 = scmp.ge.s32.totalorder %s1877_s16, 4   ;;  %s2305_s12 = smov %s1833_s13 }
 0x230   : > { %s2306_s13 = smov %s1886_s19  ;;  %s2307_s14 = smov %s1877_s16 }
 0x231   :  { %13 = sbr.rel (!%p11_p9) target bundleno = 2 (0x2), region = 107 }

// kernel: conv_bn_relu_3d.3
= control target key start
LH: loop header
LB: loop body
LE: loop exit
PB: predicated region body
PF: predicated region fallthrough
CT: control target
= control target key end

     0   :  { %s1969_s15 = smov 0   ;;  %s1971_s16 = smov 0   ;;  %s2466_s0 = inlined_call_operand.vmem [shape: bf16[24,464], index: 0, kind: input, shape index: {}]   ;;  %s2467_s1 = inlined_call_operand.vmem [shape: bf16[464,768], index: 1, kind: input, shape index: {}]   ;;  %s2468_s2 = inlined_call_operand.vmem [shape: f32[24,1], index: 2, kind: input, shape index: {}]   ;;  %s2469_s3 = inlined_call_operand.vmem [shape: f32[24,1], index: 3, kind: input, shape index: {}]   ;;  %s2470_s4 = inlined_call_operand.vmem [shape: bf16[24,768], index: 4, kind: output, shape index: {}]  }
   0x1   :  { %s1973_s17 = smov 0  }
   0x2 LB: > { %s1491_s18 = sadd.s32 4294967295, %s1941_s17   ;;  %s1986_s19 = sadd.s32 1, %s1941_s17   ;;  %s1941_s17 = sphi %s1973_s17, %s2474_s17   ;;  %s1937_s16 = sphi %s1971_s16, %s2473_s16   ;;  %s1933_s15 = sphi %s1969_s15, %s2472_s15  }
   0x3   : > { %s39_s20 = ssub.s32 %s1941_s17, %s1986_s19  ;;  %s42_s21 = sadd.s32 1, %s1937_s16 }
   0x4   : > { %p40_p0 = scmp.eq.s32.totalorder %s39_s20, 0  ;;  %p49_p1 = scmp.ne.s32.totalorder %s1937_s16, %s1933_s15 }
   0x5   : > { %p50_p2 = scmp.eq.s32.totalorder %s1941_s17, 0  ;;  %p121_p3 = scmp.eq.s32.totalorder %s1491_s18, 1 }
   0x6   : > { %s1997_s22 = scalar_select %p40_p0, %s1937_s16, %s42_s21  }
   0x7   : > { %p51_p4 = por %p50_p2, %p49_p1  ;;  %p1999_p5 = por %p121_p3, %p49_p1 }
   0x8   : > { %p1494_p6 = scmp.ge.s32.totalorder %s1941_s17, 2 }
   0xa   : > { %152 = sbr.rel (%p1494_p6) target bundleno = 87 (0x57), region = 28 }
   0xf   : > { %155 = sbr.rel (!%p51_p4) target bundleno = 87 (0x57), region = 32  ;;  %s157_s24 = sand.u32 (%p51_p4), 1, %s1937_s16  }
  0x10   : > { %s1727_s25 = smul.u32 (%p51_p4), 12, %s1941_s17 }
  0x11   : > { %s1763_s26 = smul.u32 (%p51_p4), 696, %s157_s24 }
  0x12   : > { %s2009_s29 = scalar_lea.vmem (%p51_p4), %s2467_s1, %s1727_s25 }
  0x13   : > { %v177_v0 = vld [vmem:[%s2009_s29] sm:$0xff] (%p51_p4)  ;;  %v179_v1 = vld [vmem:[%s2009_s29 + $0x18] sm:$0xff] (%p51_p4)  ;;  %v181_v2 = vld [vmem:[%s2009_s29 + $0x30] sm:$0xff] (%p51_p4)  ;;  %s2014_s30 = scalar_lea.vmem (%p51_p4), [#allocation2], %s1763_s26 }
  0x14   : > { %178 = vst [vmem:[%s2014_s30] sm:$0xff] %v177_v0  ;;  %180 = vst [vmem:[%s2014_s30 + $0xc] sm:$0xff] %v179_v1  ;;  %v183_v3 = vld [vmem:[%s2009_s29 + $0x48] sm:$0xff]  ;;  %v185_v4 = vld [vmem:[%s2009_s29 + $0x60] sm:$0xff] }
  0x15   : > { %182 = vst [vmem:[%s2014_s30 + $0x18] sm:$0xff] %v181_v2  ;;  %v187_v5 = vld [vmem:[%s2009_s29 + $0x78] sm:$0xff]  ;;  %184 = vst [vmem:[%s2014_s30 + $0x24] sm:$0xff] %v183_v3  ;;  %v189_v6 = vld [vmem:[%s2009_s29 + $0x90] sm:$0xff] }
  0x16   : > { %186 = vst [vmem:[%s2014_s30 + $0x30] sm:$0xff] %v185_v4  ;;  %188 = vst [vmem:[%s2014_s30 + $0x3c] sm:$0xff] %v187_v5  ;;  %v191_v7 = vld [vmem:[%s2009_s29 + $0xa8] sm:$0xff]  ;;  %v193_v8 = vld [vmem:[%s2009_s29 + $0xc0] sm:$0xff] }
  0x17   : > { %190 = vst [vmem:[%s2014_s30 + $0x48] sm:$0xff] %v189_v6  ;;  %192 = vst [vmem:[%s2014_s30 + $0x54] sm:$0xff] %v191_v7  ;;  %v195_v9 = vld [vmem:[%s2009_s29 + $0xd8] sm:$0xff]  ;;  %v197_v10 = vld [vmem:[%s2009_s29 + $0xf0] sm:$0xff] }
  0x18   : > { %194 = vst [vmem:[%s2014_s30 + $0x60] sm:$0xff] %v193_v8  ;;  %v199_v11 = vld [vmem:[%s2009_s29 + $0x108] sm:$0xff]  ;;  %196 = vst [vmem:[%s2014_s30 + $0x6c] sm:$0xff] %v195_v9  ;;  %v201_v12 = vld [vmem:[%s2009_s29 + $0x120] sm:$0xff] }
  0x19   : > { %198 = vst [vmem:[%s2014_s30 + $0x78] sm:$0xff] %v197_v10  ;;  %200 = vst [vmem:[%s2014_s30 + $0x84] sm:$0xff] %v199_v11  ;;  %v203_v13 = vld [vmem:[%s2009_s29 + $0x138] sm:$0xff]  ;;  %v205_v14 = vld [vmem:[%s2009_s29 + $0x150] sm:$0xff] }
  0x1a   : > { %202 = vst [vmem:[%s2014_s30 + $0x90] sm:$0xff] %v201_v12  ;;  %204 = vst [vmem:[%s2014_s30 + $0x9c] sm:$0xff] %v203_v13  ;;  %v207_v15 = vld [vmem:[%s2009_s29 + $0x168] sm:$0xff]  ;;  %v209_v16 = vld [vmem:[%s2009_s29 + $0x180] sm:$0xff] }
  0x1b   : > { %206 = vst [vmem:[%s2014_s30 + $0xa8] sm:$0xff] %v205_v14  ;;  %v211_v17 = vld [vmem:[%s2009_s29 + $0x198] sm:$0xff]  ;;  %208 = vst [vmem:[%s2014_s30 + $0xb4] sm:$0xff] %v207_v15  ;;  %v213_v18 = vld [vmem:[%s2009_s29 + $0x1b0] sm:$0xff] }
  0x1c   : > { %210 = vst [vmem:[%s2014_s30 + $0xc0] sm:$0xff] %v209_v16  ;;  %212 = vst [vmem:[%s2014_s30 + $0xcc] sm:$0xff] %v211_v17  ;;  %v215_v19 = vld [vmem:[%s2009_s29 + $0x1c8] sm:$0xff]  ;;  %v217_v20 = vld [vmem:[%s2009_s29 + $0x1e0] sm:$0xff] }
  0x1d   : > { %214 = vst [vmem:[%s2014_s30 + $0xd8] sm:$0xff] %v213_v18  ;;  %216 = vst [vmem:[%s2014_s30 + $0xe4] sm:$0xff] %v215_v19  ;;  %v219_v21 = vld [vmem:[%s2009_s29 + $0x1f8] sm:$0xff]  ;;  %v221_v22 = vld [vmem:[%s2009_s29 + $0x210] sm:$0xff] }
  0x1e   : > { %218 = vst [vmem:[%s2014_s30 + $0xf0] sm:$0xff] %v217_v20  ;;  %v223_v23 = vld [vmem:[%s2009_s29 + $0x228] sm:$0xff]  ;;  %220 = vst [vmem:[%s2014_s30 + $0xfc] sm:$0xff] %v219_v21  ;;  %v225_v24 = vld [vmem:[%s2009_s29 + $0x240] sm:$0xff] }
  0x1f   : > { %222 = vst [vmem:[%s2014_s30 + $0x108] sm:$0xff] %v221_v22  ;;  %224 = vst [vmem:[%s2014_s30 + $0x114] sm:$0xff] %v223_v23  ;;  %v227_v25 = vld [vmem:[%s2009_s29 + $0x258] sm:$0xff]  ;;  %v229_v26 = vld [vmem:[%s2009_s29 + $0x270] sm:$0xff] }
  0x20   : > { %226 = vst [vmem:[%s2014_s30 + $0x120] sm:$0xff] %v225_v24  ;;  %228 = vst [vmem:[%s2014_s30 + $0x12c] sm:$0xff] %v227_v25  ;;  %v231_v27 = vld [vmem:[%s2009_s29 + $0x288] sm:$0xff]  ;;  %v233_v28 = vld [vmem:[%s2009_s29 + $0x2a0] sm:$0xff] }
  0x21   : > { %230 = vst [vmem:[%s2014_s30 + $0x138] sm:$0xff] %v229_v26  ;;  %v235_v29 = vld [vmem:[%s2009_s29 + $0x2b8] sm:$0xff]  ;;  %232 = vst [vmem:[%s2014_s30 + $0x144] sm:$0xff] %v231_v27  ;;  %v237_v30 = vld [vmem:[%s2009_s29 + $0x2d0] sm:$0xff] }
  0x22   : > { %234 = vst [vmem:[%s2014_s30 + $0x150] sm:$0xff] %v233_v28  ;;  %236 = vst [vmem:[%s2014_s30 + $0x15c] sm:$0xff] %v235_v29  ;;  %v239_v31 = vld [vmem:[%s2009_s29 + $0x2e8] sm:$0xff]  ;;  %v241_v32 = vld [vmem:[%s2009_s29 + $0x300] sm:$0xff] }
  0x23   : > { %238 = vst [vmem:[%s2014_s30 + $0x168] sm:$0xff] %v237_v30  ;;  %240 = vst [vmem:[%s2014_s30 + $0x174] sm:$0xff] %v239_v31  ;;  %v243_v33 = vld [vmem:[%s2009_s29 + $0x318] sm:$0xff]  ;;  %v245_v34 = vld [vmem:[%s2009_s29 + $0x330] sm:$0xff] }
  0x24   : > { %242 = vst [vmem:[%s2014_s30 + $0x180] sm:$0xff] %v241_v32  ;;  %v247_v35 = vld [vmem:[%s2009_s29 + $0x348] sm:$0xff]  ;;  %244 = vst [vmem:[%s2014_s30 + $0x18c] sm:$0xff] %v243_v33  ;;  %v249_v36 = vld [vmem:[%s2009_s29 + $0x360] sm:$0xff] }
  0x25   : > { %246 = vst [vmem:[%s2014_s30 + $0x198] sm:$0xff] %v245_v34  ;;  %248 = vst [vmem:[%s2014_s30 + $0x1a4] sm:$0xff] %v247_v35  ;;  %v251_v37 = vld [vmem:[%s2009_s29 + $0x378] sm:$0xff]  ;;  %v253_v38 = vld [vmem:[%s2009_s29 + $0x390] sm:$0xff] }
  0x26   : > { %250 = vst [vmem:[%s2014_s30 + $0x1b0] sm:$0xff] %v249_v36  ;;  %252 = vst [vmem:[%s2014_s30 + $0x1bc] sm:$0xff] %v251_v37  ;;  %v255_v39 = vld [vmem:[%s2009_s29 + $0x3a8] sm:$0xff]  ;;  %v257_v40 = vld [vmem:[%s2009_s29 + $0x3c0] sm:$0xff] }
  0x27   : > { %254 = vst [vmem:[%s2014_s30 + $0x1c8] sm:$0xff] %v253_v38  ;;  %v259_v41 = vld [vmem:[%s2009_s29 + $0x3d8] sm:$0xff]  ;;  %256 = vst [vmem:[%s2014_s30 + $0x1d4] sm:$0xff] %v255_v39  ;;  %v261_v42 = vld [vmem:[%s2009_s29 + $0x3f0] sm:$0xff] }
  0x28   : > { %258 = vst [vmem:[%s2014_s30 + $0x1e0] sm:$0xff] %v257_v40  ;;  %260 = vst [vmem:[%s2014_s30 + $0x1ec] sm:$0xff] %v259_v41  ;;  %v263_v43 = vld [vmem:[%s2009_s29 + $0x408] sm:$0xff]  ;;  %v265_v44 = vld [vmem:[%s2009_s29 + $0x420] sm:$0xff] }
  0x29   : > { %262 = vst [vmem:[%s2014_s30 + $0x1f8] sm:$0xff] %v261_v42  ;;  %264 = vst [vmem:[%s2014_s30 + $0x204] sm:$0xff] %v263_v43  ;;  %v267_v45 = vld [vmem:[%s2009_s29 + $0x438] sm:$0xff]  ;;  %v269_v46 = vld [vmem:[%s2009_s29 + $0x450] sm:$0xff] }
  0x2a   : > { %266 = vst [vmem:[%s2014_s30 + $0x210] sm:$0xff] %v265_v44  ;;  %v271_v47 = vld [vmem:[%s2009_s29 + $0x468] sm:$0xff]  ;;  %268 = vst [vmem:[%s2014_s30 + $0x21c] sm:$0xff] %v267_v45  ;;  %v273_v48 = vld [vmem:[%s2009_s29 + $0x480] sm:$0xff] }
  0x2b   : > { %270 = vst [vmem:[%s2014_s30 + $0x228] sm:$0xff] %v269_v46  ;;  %272 = vst [vmem:[%s2014_s30 + $0x234] sm:$0xff] %v271_v47  ;;  %v275_v49 = vld [vmem:[%s2009_s29 + $0x498] sm:$0xff]  ;;  %v277_v50 = vld [vmem:[%s2009_s29 + $0x4b0] sm:$0xff] }
  0x2c   : > { %274 = vst [vmem:[%s2014_s30 + $0x240] sm:$0xff] %v273_v48  ;;  %276 = vst [vmem:[%s2014_s30 + $0x24c] sm:$0xff] %v275_v49  ;;  %v279_v51 = vld [vmem:[%s2009_s29 + $0x4c8] sm:$0xff]  ;;  %v281_v52 = vld [vmem:[%s2009_s29 + $0x4e0] sm:$0xff] }
  0x2d   : > { %278 = vst [vmem:[%s2014_s30 + $0x258] sm:$0xff] %v277_v50  ;;  %v283_v53 = vld [vmem:[%s2009_s29 + $0x4f8] sm:$0xff]  ;;  %280 = vst [vmem:[%s2014_s30 + $0x264] sm:$0xff] %v279_v51  ;;  %v285_v54 = vld [vmem:[%s2009_s29 + $0x510] sm:$0xff] }
  0x2e   : > { %282 = vst [vmem:[%s2014_s30 + $0x270] sm:$0xff] %v281_v52  ;;  %284 = vst [vmem:[%s2014_s30 + $0x27c] sm:$0xff] %v283_v53  ;;  %v287_v55 = vld [vmem:[%s2009_s29 + $0x528] sm:$0xff]  ;;  %v289_v56 = vld [vmem:[%s2009_s29 + $0x540] sm:$0xff] }
  0x2f   : > { %286 = vst [vmem:[%s2014_s30 + $0x288] sm:$0xff] %v285_v54  ;;  %288 = vst [vmem:[%s2014_s30 + $0x294] sm:$0xff] %v287_v55  ;;  %v291_v57 = vld [vmem:[%s2009_s29 + $0x558] sm:$0xff]  ;;  %v1496_v58 = vld [vmem:[%s2009_s29 + $0x8] sm:$0xf] }
  0x30   : > { %290 = vst [vmem:[%s2014_s30 + $0x2a0] sm:$0xff] %v289_v56  ;;  %v1498_v59 = vld [vmem:[%s2009_s29 + $0x20] sm:$0xf]  ;;  %292 = vst [vmem:[%s2014_s30 + $0x2ac] sm:$0xff] %v291_v57  ;;  %v1500_v60 = vld [vmem:[%s2009_s29 + $0x38] sm:$0xf] }
  0x31   : > { %1497 = vst [vmem:[%s2014_s30 + $0x8] sm:$0xf] %v1496_v58  ;;  %1499 = vst [vmem:[%s2014_s30 + $0x14] sm:$0xf] %v1498_v59  ;;  %v1502_v61 = vld [vmem:[%s2009_s29 + $0x50] sm:$0xf] }
  0x32   : > { %v1504_v62 = vld [vmem:[%s2009_s29 + $0x68] sm:$0xf]  ;;  %1501 = vst [vmem:[%s2014_s30 + $0x20] sm:$0xf] %v1500_v60  ;;  %1503 = vst [vmem:[%s2014_s30 + $0x2c] sm:$0xf] %v1502_v61 }
  0x33   : > { %1505 = vst [vmem:[%s2014_s30 + $0x38] sm:$0xf] %v1504_v62  ;;  %v1506_v63 = vld [vmem:[%s2009_s29 + $0x80] sm:$0xf]  ;;  %v1508_v0 = vld [vmem:[%s2009_s29 + $0x98] sm:$0xf] }
  0x34   : > { %v1510_v1 = vld [vmem:[%s2009_s29 + $0xb0] sm:$0xf]  ;;  %1507 = vst [vmem:[%s2014_s30 + $0x44] sm:$0xf] %v1506_v63  ;;  %1509 = vst [vmem:[%s2014_s30 + $0x50] sm:$0xf] %v1508_v0 }
  0x35   : > { %1511 = vst [vmem:[%s2014_s30 + $0x5c] sm:$0xf] %v1510_v1  ;;  %v1512_v2 = vld [vmem:[%s2009_s29 + $0xc8] sm:$0xf]  ;;  %v1514_v3 = vld [vmem:[%s2009_s29 + $0xe0] sm:$0xf] }
  0x36   : > { %v1516_v4 = vld [vmem:[%s2009_s29 + $0xf8] sm:$0xf]  ;;  %1513 = vst [vmem:[%s2014_s30 + $0x68] sm:$0xf] %v1512_v2  ;;  %1515 = vst [vmem:[%s2014_s30 + $0x74] sm:$0xf] %v1514_v3 }
  0x37   : > { %1517 = vst [vmem:[%s2014_s30 + $0x80] sm:$0xf] %v1516_v4  ;;  %v1518_v5 = vld [vmem:[%s2009_s29 + $0x110] sm:$0xf]  ;;  %v1520_v6 = vld [vmem:[%s2009_s29 + $0x128] sm:$0xf] }
  0x38   : > { %v1522_v7 = vld [vmem:[%s2009_s29 + $0x140] sm:$0xf]  ;;  %1519 = vst [vmem:[%s2014_s30 + $0x8c] sm:$0xf] %v1518_v5  ;;  %1521 = vst [vmem:[%s2014_s30 + $0x98] sm:$0xf] %v1520_v6 }
  0x39   : > { %1523 = vst [vmem:[%s2014_s30 + $0xa4] sm:$0xf] %v1522_v7  ;;  %v1524_v8 = vld [vmem:[%s2009_s29 + $0x158] sm:$0xf]  ;;  %v1526_v9 = vld [vmem:[%s2009_s29 + $0x170] sm:$0xf] }
  0x3a   : > { %v1528_v10 = vld [vmem:[%s2009_s29 + $0x188] sm:$0xf]  ;;  %1525 = vst [vmem:[%s2014_s30 + $0xb0] sm:$0xf] %v1524_v8  ;;  %1527 = vst [vmem:[%s2014_s30 + $0xbc] sm:$0xf] %v1526_v9 }
  0x3b   : > { %1529 = vst [vmem:[%s2014_s30 + $0xc8] sm:$0xf] %v1528_v10  ;;  %v1530_v11 = vld [vmem:[%s2009_s29 + $0x1a0] sm:$0xf]  ;;  %v1532_v12 = vld [vmem:[%s2009_s29 + $0x1b8] sm:$0xf] }
  0x3c   : > { %v1534_v13 = vld [vmem:[%s2009_s29 + $0x1d0] sm:$0xf]  ;;  %1531 = vst [vmem:[%s2014_s30 + $0xd4] sm:$0xf] %v1530_v11  ;;  %1533 = vst [vmem:[%s2014_s30 + $0xe0] sm:$0xf] %v1532_v12 }
  0x3d   : > { %1535 = vst [vmem:[%s2014_s30 + $0xec] sm:$0xf] %v1534_v13  ;;  %v1536_v14 = vld [vmem:[%s2009_s29 + $0x1e8] sm:$0xf]  ;;  %v1538_v15 = vld [vmem:[%s2009_s29 + $0x200] sm:$0xf] }
  0x3e   : > { %v1540_v16 = vld [vmem:[%s2009_s29 + $0x218] sm:$0xf]  ;;  %1537 = vst [vmem:[%s2014_s30 + $0xf8] sm:$0xf] %v1536_v14  ;;  %1539 = vst [vmem:[%s2014_s30 + $0x104] sm:$0xf] %v1538_v15 }
  0x3f   : > { %1541 = vst [vmem:[%s2014_s30 + $0x110] sm:$0xf] %v1540_v16  ;;  %v1542_v17 = vld [vmem:[%s2009_s29 + $0x230] sm:$0xf]  ;;  %v1544_v18 = vld [vmem:[%s2009_s29 + $0x248] sm:$0xf] }
  0x40   : > { %v1546_v19 = vld [vmem:[%s2009_s29 + $0x260] sm:$0xf]  ;;  %1543 = vst [vmem:[%s2014_s30 + $0x11c] sm:$0xf] %v1542_v17  ;;  %1545 = vst [vmem:[%s2014_s30 + $0x128] sm:$0xf] %v1544_v18 }
  0x41   : > { %1547 = vst [vmem:[%s2014_s30 + $0x134] sm:$0xf] %v1546_v19  ;;  %v1548_v20 = vld [vmem:[%s2009_s29 + $0x278] sm:$0xf]  ;;  %v1550_v21 = vld [vmem:[%s2009_s29 + $0x290] sm:$0xf] }
  0x42   : > { %v1552_v22 = vld [vmem:[%s2009_s29 + $0x2a8] sm:$0xf]  ;;  %1549 = vst [vmem:[%s2014_s30 + $0x140] sm:$0xf] %v1548_v20  ;;  %1551 = vst [vmem:[%s2014_s30 + $0x14c] sm:$0xf] %v1550_v21 }
  0x43   : > { %1553 = vst [vmem:[%s2014_s30 + $0x158] sm:$0xf] %v1552_v22  ;;  %v1554_v23 = vld [vmem:[%s2009_s29 + $0x2c0] sm:$0xf]  ;;  %v1556_v24 = vld [vmem:[%s2009_s29 + $0x2d8] sm:$0xf] }
  0x44   : > { %v1558_v25 = vld [vmem:[%s2009_s29 + $0x2f0] sm:$0xf]  ;;  %1555 = vst [vmem:[%s2014_s30 + $0x164] sm:$0xf] %v1554_v23  ;;  %1557 = vst [vmem:[%s2014_s30 + $0x170] sm:$0xf] %v1556_v24 }
  0x45   : > { %1559 = vst [vmem:[%s2014_s30 + $0x17c] sm:$0xf] %v1558_v25  ;;  %v1560_v26 = vld [vmem:[%s2009_s29 + $0x308] sm:$0xf]  ;;  %v1562_v27 = vld [vmem:[%s2009_s29 + $0x320] sm:$0xf] }
  0x46   : > { %v1564_v28 = vld [vmem:[%s2009_s29 + $0x338] sm:$0xf]  ;;  %1561 = vst [vmem:[%s2014_s30 + $0x188] sm:$0xf] %v1560_v26  ;;  %1563 = vst [vmem:[%s2014_s30 + $0x194] sm:$0xf] %v1562_v27 }
  0x47   : > { %1565 = vst [vmem:[%s2014_s30 + $0x1a0] sm:$0xf] %v1564_v28  ;;  %v1566_v29 = vld [vmem:[%s2009_s29 + $0x350] sm:$0xf]  ;;  %v1568_v30 = vld [vmem:[%s2009_s29 + $0x368] sm:$0xf] }
  0x48   : > { %v1570_v31 = vld [vmem:[%s2009_s29 + $0x380] sm:$0xf]  ;;  %1567 = vst [vmem:[%s2014_s30 + $0x1ac] sm:$0xf] %v1566_v29  ;;  %1569 = vst [vmem:[%s2014_s30 + $0x1b8] sm:$0xf] %v1568_v30 }
  0x49   : > { %1571 = vst [vmem:[%s2014_s30 + $0x1c4] sm:$0xf] %v1570_v31  ;;  %v1572_v32 = vld [vmem:[%s2009_s29 + $0x398] sm:$0xf]  ;;  %v1574_v33 = vld [vmem:[%s2009_s29 + $0x3b0] sm:$0xf] }
  0x4a   : > { %v1576_v34 = vld [vmem:[%s2009_s29 + $0x3c8] sm:$0xf]  ;;  %1573 = vst [vmem:[%s2014_s30 + $0x1d0] sm:$0xf] %v1572_v32  ;;  %1575 = vst [vmem:[%s2014_s30 + $0x1dc] sm:$0xf] %v1574_v33 }
  0x4b   : > { %1577 = vst [vmem:[%s2014_s30 + $0x1e8] sm:$0xf] %v1576_v34  ;;  %v1578_v35 = vld [vmem:[%s2009_s29 + $0x3e0] sm:$0xf]  ;;  %v1580_v36 = vld [vmem:[%s2009_s29 + $0x3f8] sm:$0xf] }
  0x4c   : > { %v1582_v37 = vld [vmem:[%s2009_s29 + $0x410] sm:$0xf]  ;;  %1579 = vst [vmem:[%s2014_s30 + $0x1f4] sm:$0xf] %v1578_v35  ;;  %1581 = vst [vmem:[%s2014_s30 + $0x200] sm:$0xf] %v1580_v36 }
  0x4d   : > { %1583 = vst [vmem:[%s2014_s30 + $0x20c] sm:$0xf] %v1582_v37  ;;  %v1584_v38 = vld [vmem:[%s2009_s29 + $0x428] sm:$0xf]  ;;  %v1586_v39 = vld [vmem:[%s2009_s29 + $0x440] sm:$0xf] }
  0x4e   : > { %v1588_v40 = vld [vmem:[%s2009_s29 + $0x458] sm:$0xf]  ;;  %1585 = vst [vmem:[%s2014_s30 + $0x218] sm:$0xf] %v1584_v38  ;;  %1587 = vst [vmem:[%s2014_s30 + $0x224] sm:$0xf] %v1586_v39 }
  0x4f   : > { %1589 = vst [vmem:[%s2014_s30 + $0x230] sm:$0xf] %v1588_v40  ;;  %v1590_v41 = vld [vmem:[%s2009_s29 + $0x470] sm:$0xf]  ;;  %v1592_v42 = vld [vmem:[%s2009_s29 + $0x488] sm:$0xf] }
  0x50   : > { %v1594_v43 = vld [vmem:[%s2009_s29 + $0x4a0] sm:$0xf]  ;;  %1591 = vst [vmem:[%s2014_s30 + $0x23c] sm:$0xf] %v1590_v41  ;;  %1593 = vst [vmem:[%s2014_s30 + $0x248] sm:$0xf] %v1592_v42 }
  0x51   : > { %1595 = vst [vmem:[%s2014_s30 + $0x254] sm:$0xf] %v1594_v43  ;;  %v1596_v44 = vld [vmem:[%s2009_s29 + $0x4b8] sm:$0xf]  ;;  %v1598_v45 = vld [vmem:[%s2009_s29 + $0x4d0] sm:$0xf] }
  0x52   : > { %v1600_v46 = vld [vmem:[%s2009_s29 + $0x4e8] sm:$0xf]  ;;  %1597 = vst [vmem:[%s2014_s30 + $0x260] sm:$0xf] %v1596_v44  ;;  %1599 = vst [vmem:[%s2014_s30 + $0x26c] sm:$0xf] %v1598_v45 }
  0x53   : > { %1601 = vst [vmem:[%s2014_s30 + $0x278] sm:$0xf] %v1600_v46  ;;  %v1602_v47 = vld [vmem:[%s2009_s29 + $0x500] sm:$0xf]  ;;  %v1604_v48 = vld [vmem:[%s2009_s29 + $0x518] sm:$0xf] }
  0x54   : > { %v1606_v49 = vld [vmem:[%s2009_s29 + $0x530] sm:$0xf]  ;;  %1603 = vst [vmem:[%s2014_s30 + $0x284] sm:$0xf] %v1602_v47  ;;  %1605 = vst [vmem:[%s2014_s30 + $0x290] sm:$0xf] %v1604_v48 }
  0x55   : > { %1607 = vst [vmem:[%s2014_s30 + $0x29c] sm:$0xf] %v1606_v49  ;;  %v1608_v50 = vld [vmem:[%s2009_s29 + $0x548] sm:$0xf]  ;;  %v1610_v51 = vld [vmem:[%s2009_s29 + $0x560] sm:$0xf] }
  0x56   : > { %1609 = vst [vmem:[%s2014_s30 + $0x2a8] sm:$0xf] %v1608_v50  ;;  %1611 = vst [vmem:[%s2014_s30 + $0x2b4] sm:$0xf] %v1610_v51 }
  0x57 PF: > { %p1612_p7 = scmp.ge.s32.totalorder %s1941_s17, 1  ;;  %p421_p8 = scmp.lt.s32.totalorder %s1941_s17, 3 }
  0x59   : > { %p422_p9 = pnand %p1612_p7, %p421_p8 }
  0x5a   : > { %s428_s5 = sand.u32 (!%p422_p9), 1, %s1933_s15  }
  0x5b   : > { %425 = sbr.rel (%p422_p9) target bundleno = 436 (0x1b4), region = 58 }
  0x5c   : > { %s1764_s6 = smul.u32 (!%p422_p9), 696, %s428_s5 }
  0x5d   : > { %s1765_s14 = smul.u32 (!%p422_p9), 36, %s428_s5 }
  0x5e   : > { %s2269_s20 = scalar_lea.vmem (!%p422_p9), [#allocation2], %s1764_s6 }
  0x5f   : > { %s2431_s15 = scalar_lea.vmem (!%p422_p9), [#allocation3], %s1765_s14 }
  0x60   : > { %vm1073_vm0 = vcmask 654336   ;;  %v2253_v52 = vld [vmem:[%s2466_s0 + $0x4] ss:$16 sps:$4 sm:$0xff]   ;;  %v2258_v53 = vld [vmem:[%s2466_s0 + $0xc] ss:$16 sps:$4 sm:$0xff]   ;;  %v1943_v54 = vmov 0  }
  0x61   : > { %1791 = vset.pattern.permute.xlu0 %v1943_v54  ;;  %1792 = vset.pattern.permute.xlu1 %v1943_v54  ;;  %v1278_v55 = vld [vmem:[%s2468_s2] sm:$0xff]  ;;  %v1280_v56 = vld [vmem:[%s2468_s2 + $0x10] sm:$0xff]  ;;  %v460_v48 = vld [vmem:[%s2466_s0 + $0x28] sm:$0xff]  ;;  %s1734_s5 = smul.u32 (%p1999_p5), 12, %s1491_s18 }
  0x62   : > { %1112 = vmatprep.mubr.bf16.mxu0 %v2253_v52  ;;  %v1793_v57 = vld [vmem:[%s2269_s20 + $0xac] ss:$12 sps:$4 sm:$0xff]   ;;  %1708 = vmatprep.mubr.msk.bf16.mxu1 %vm1073_vm0, %v2258_v53  ;;  %v1795_v58 = vld [vmem:[%s2269_s20 + $0xa8] ss:$12 sps:$4 sm:$0xff]   ;;  %v1798_v60 = vld [vmem:[%s2269_s20 + $0x90] ss:$12 sps:$4 sm:$0xff]  }
  0x63   : > { %1283 = vperm.xlu0 %1791, %v1278_v55   ;;  %1293 = vperm.xlu1 %1792, %v1280_v56   ;;  %v1796_v59 = vld [vmem:[%s2269_s20 + $0x94] ss:$12 sps:$4 sm:$0xff]   ;;  %v1799_v61 = vld [vmem:[%s2269_s20 + $0x7c] ss:$12 sps:$4 sm:$0xff]   ;;  %v1804_v62 = vld [vmem:[%s2269_s20 + $0x22c] ss:$12 sps:$4 sm:$0xff]   ;;  %s1389_s23 = scalar_lea.vmem (%p1999_p5), %s2470_s4, %s1734_s5 }
  0x64   : > { %1080 = vmatprep.subr.bf16.mxu0 %v1793_v57  ;;  %v1807_v63 = vld [vmem:[%s2269_s20 + $0x228] ss:$12 sps:$4 sm:$0xff]   ;;  %v1801_v0 = vld [vmem:[%s2269_s20 + $0x78] ss:$12 sps:$4 sm:$0xff]   ;;  %1131 = vmatprep.subr.bf16.mxu1 %v1804_v62  ;;  %v1813_v3 = vld [vmem:[%s2269_s20 + $0x210] ss:$12 sps:$4 sm:$0xff]  }
  0x65   : > { %1081 = vmatpush1.bf16.msra.mxu0 %v1795_v58  ;;  %v1802_v1 = vld [vmem:[%s2269_s20 + $0x64] ss:$12 sps:$4 sm:$0xff]   ;;  %1132 = vmatpush1.bf16.msra.mxu1 %v1807_v63  ;;  %v1810_v2 = vld [vmem:[%s2269_s20 + $0x214] ss:$12 sps:$4 sm:$0xff]   ;;  %v1808_v5 = vld [vmem:[%s2269_s20 + $0x4c] ss:$12 sps:$4 sm:$0xff]   ;;  %v2341_v58 = vcombine.high %v460_v48, %v460_v48 }
  0x66   : > { %1082 = vmatprep.subr.bf16.mxu0 %v1796_v59  ;;  %1133 = vmatprep.subr.bf16.mxu1 %v1810_v2  ;;  %v1806_v4 = vld [vmem:[%s2269_s20 + $0x60] ss:$12 sps:$4 sm:$0xff]   ;;  %v1816_v6 = vld [vmem:[%s2269_s20 + $0x1fc] ss:$12 sps:$4 sm:$0xff]   ;;  %v1819_v7 = vld [vmem:[%s2269_s20 + $0x1f8] ss:$12 sps:$4 sm:$0xff]  }
  0x67   : > { %v1822_v8 = vld [vmem:[%s2269_s20 + $0x1e4] ss:$12 sps:$4 sm:$0xff]   ;;  %v1812_v9 = vld [vmem:[%s2269_s20 + $0x48] ss:$12 sps:$4 sm:$0xff]   ;;  %v1825_v11 = vld [vmem:[%s2269_s20 + $0x1e0] ss:$12 sps:$4 sm:$0xff]  }
  0x68   : > { %v1814_v10 = vld [vmem:[%s2269_s20 + $0x34] ss:$12 sps:$4 sm:$0xff]   ;;  %v1828_v12 = vld [vmem:[%s2269_s20 + $0x1cc] ss:$12 sps:$4 sm:$0xff]   ;;  %v1818_v13 = vld [vmem:[%s2269_s20 + $0x30] ss:$12 sps:$4 sm:$0xff]  }
  0x69   : > { %1083 = vmatpush1.bf16.msra.mxu0 %v1798_v60  ;;  %1134 = vmatpush1.bf16.msra.mxu1 %v1813_v3  ;;  %v1820_v14 = vld [vmem:[%s2269_s20 + $0x1c] ss:$12 sps:$4 sm:$0xff]   ;;  %v1834_v16 = vld [vmem:[%s2269_s20 + $0x1b4] ss:$12 sps:$4 sm:$0xff]   ;;  %v1824_v17 = vld [vmem:[%s2269_s20 + $0x18] ss:$12 sps:$4 sm:$0xff]  }
  0x6a   : > { %1084 = vmatprep.subr.bf16.mxu0 %v1799_v61  ;;  %1135 = vmatprep.subr.bf16.mxu1 %v1816_v6  ;;  %v1831_v15 = vld [vmem:[%s2269_s20 + $0x1c8] ss:$12 sps:$4 sm:$0xff]   ;;  %v1826_v18 = vld [vmem:[%s2269_s20 + $0x4] ss:$12 sps:$4 sm:$0xff]   ;;  %v1830_v21 = vld [vmem:[%s2269_s20] ss:$12 sps:$4 sm:$0xff]  }
  0x6b   : > { %v1837_v19 = vld [vmem:[%s2269_s20 + $0x1b0] ss:$12 sps:$4 sm:$0xff]   ;;  %v1832_v22 = vld [vmem:[%s2269_s20 + $0x16c] ss:$12 sps:$4 sm:$0xff]   ;;  %v1836_v25 = vld [vmem:[%s2269_s20 + $0x168] ss:$12 sps:$4 sm:$0xff]  }
  0x6c   : > { %v1840_v20 = vld [vmem:[%s2269_s20 + $0x19c] ss:$12 sps:$4 sm:$0xff]   ;;  %v1843_v23 = vld [vmem:[%s2269_s20 + $0x198] ss:$12 sps:$4 sm:$0xff]   ;;  %v1838_v26 = vld [vmem:[%s2269_s20 + $0x154] ss:$12 sps:$4 sm:$0xff]  }
  0x6d   : > { %1085 = vmatpush1.bf16.msra.mxu0 %v1801_v0  ;;  %1136 = vmatpush1.bf16.msra.mxu1 %v1819_v7  ;;  %v1846_v24 = vld [vmem:[%s2269_s20 + $0x184] ss:$12 sps:$4 sm:$0xff]   ;;  %v1849_v27 = vld [vmem:[%s2269_s20 + $0x180] ss:$12 sps:$4 sm:$0xff]   ;;  %v1844_v30 = vld [vmem:[%s2269_s20 + $0x13c] ss:$12 sps:$4 sm:$0xff]  }
  0x6e   : > { %1086 = vmatprep.subr.bf16.mxu0 %v1802_v1  ;;  %1137 = vmatprep.subr.bf16.mxu1 %v1822_v8  ;;  %v1852_v28 = vld [vmem:[%s2269_s20 + $0x2a4] ss:$12 sps:$4 sm:$0xff]   ;;  %v1855_v31 = vld [vmem:[%s2269_s20 + $0x2a0] ss:$12 sps:$4 sm:$0xff]   ;;  %v1861_v35 = vld [vmem:[%s2269_s20 + $0x288] ss:$12 sps:$4 sm:$0xff]   ;;  %v2358_v1 = vcombine.low %v460_v48, %v460_v48 }
  0x6f   : > { %v1842_v29 = vld [vmem:[%s2269_s20 + $0x150] ss:$12 sps:$4 sm:$0xff]   ;;  %v1858_v32 = vld [vmem:[%s2269_s20 + $0x28c] ss:$12 sps:$4 sm:$0xff]   ;;  %v1864_v36 = vld [vmem:[%s2269_s20 + $0x274] ss:$12 sps:$4 sm:$0xff]  }
  0x70   : > { %v1848_v33 = vld [vmem:[%s2269_s20 + $0x138] ss:$12 sps:$4 sm:$0xff]   ;;  %v1854_v37 = vld [vmem:[%s2269_s20 + $0x120] ss:$12 sps:$4 sm:$0xff]   ;;  %v1867_v39 = vld [vmem:[%s2269_s20 + $0x270] ss:$12 sps:$4 sm:$0xff]  }
  0x71   : > { %1087 = vmatpush1.bf16.msra.mxu0 %v1806_v4  ;;  %1138 = vmatpush1.bf16.msra.mxu1 %v1825_v11  ;;  %v1850_v34 = vld [vmem:[%s2269_s20 + $0x124] ss:$12 sps:$4 sm:$0xff]   ;;  %v1856_v38 = vld [vmem:[%s2269_s20 + $0x10c] ss:$12 sps:$4 sm:$0xff]   ;;  %v1870_v40 = vld [vmem:[%s2269_s20 + $0x25c] ss:$12 sps:$4 sm:$0xff]  }
  0x72   : > { %1088 = vmatprep.subr.bf16.mxu0 %v1808_v5  ;;  %1139 = vmatprep.subr.bf16.mxu1 %v1828_v12  ;;  %v1860_v41 = vld [vmem:[%s2269_s20 + $0x108] ss:$12 sps:$4 sm:$0xff]   ;;  %v1873_v43 = vld [vmem:[%s2269_s20 + $0x258] ss:$12 sps:$4 sm:$0xff]   ;;  %v1866_v45 = vld [vmem:[%s2269_s20 + $0xf0] ss:$12 sps:$4 sm:$0xff]  }
  0x73   : > { %v1862_v42 = vld [vmem:[%s2269_s20 + $0xf4] ss:$12 sps:$4 sm:$0xff]   ;;  %v1876_v44 = vld [vmem:[%s2269_s20 + $0x244] ss:$12 sps:$4 sm:$0xff]   ;;  %v1868_v46 = vld [vmem:[%s2269_s20 + $0xdc] ss:$12 sps:$4 sm:$0xff]  }
  0x74   : > { %v1879_v47 = vld [vmem:[%s2269_s20 + $0x240] ss:$12 sps:$4 sm:$0xff]   ;;  %v1889_v50 = vld [vmem:[%s2269_s20 + $0x170] ss:$12 sps:$4 sm:$0xff]   ;;  %v1872_v51 = vld [vmem:[%s2269_s20 + $0xd8] ss:$12 sps:$4 sm:$0xff]  }
  0x75   : > { %1089 = vmatpush1.bf16.msra.mxu0 %v1812_v9  ;;  %1140 = vmatpush1.bf16.msra.mxu1 %v1831_v15  ;;  %v2334_v49 = vld [vmem:[%s2466_s0 + $0x8] ss:$16 sps:$4 sm:$0xff]   ;;  %v2348_v60 = vld [vmem:[%s2466_s0] ss:$16 sps:$4 sm:$0xff]  }
  0x76   : > { %1090 = vmatprep.subr.bf16.mxu0 %v1814_v10  ;;  %1141 = vmatprep.subr.bf16.mxu1 %v1834_v16  ;;  %v1874_v55 = vld [vmem:[%s2269_s20 + $0xc4] ss:$12 sps:$4 sm:$0xff]   ;;  %v1878_v59 = vld [vmem:[%s2269_s20 + $0xc0] ss:$12 sps:$4 sm:$0xff]   ;;  %v1898_v3 = vld [vmem:[%s2269_s20 + $0x128] ss:$12 sps:$4 sm:$0xff]  }
  0x77   : > { %v1890_v56 = vld [vmem:[%s2269_s20 + $0xb0] ss:$12 sps:$4 sm:$0xff]   ;;  %v1892_v57 = vld [vmem:[%s2269_s20 + $0x158] ss:$12 sps:$4 sm:$0xff]   ;;  %v1895_v62 = vld [vmem:[%s2269_s20 + $0x140] ss:$12 sps:$4 sm:$0xff]  }
  0x78   : > { %v1893_v61 = vld [vmem:[%s2269_s20 + $0x98] ss:$12 sps:$4 sm:$0xff]   ;;  %v1886_v0 = vld [vmem:[%s2269_s20 + $0x230] ss:$12 sps:$4 sm:$0xff]   ;;  %v1896_v2 = vld [vmem:[%s2269_s20 + $0x80] ss:$12 sps:$4 sm:$0xff]  }
  0x79   : > { %1091 = vmatpush1.bf16.msra.mxu0 %v1818_v13  ;;  %1142 = vmatpush1.bf16.msra.mxu1 %v1837_v19  ;;  %v459_v63 = vld [vmem:[%s2466_s0 + $0x20] sm:$0xff]  ;;  %v1279_v6 = vld [vmem:[%s2468_s2 + $0x8] sm:$0xff] }
  0x7a   : > { %1092 = vmatprep.subr.bf16.mxu0 %v1820_v14  ;;  %1143 = vmatprep.subr.bf16.mxu1 %v1840_v20  ;;  %v1618_v4 = vcombine.high %v459_v63, %v459_v63  ;;  %v1887_v5 = vld [vmem:[%s2269_s20 + $0x218] ss:$12 sps:$4 sm:$0xff]   ;;  %v1899_v7 = vld [vmem:[%s2269_s20 + $0x68] ss:$12 sps:$4 sm:$0xff]   ;;  %v1901_v9 = vld [vmem:[%s2269_s20 + $0x110] ss:$12 sps:$4 sm:$0xff]   ;;  %v1617_v10 = vcombine.low %v459_v63, %v459_v63 }
  0x7b   : > { %v1305_v8 = vld [vmem:[%s2469_s3] sm:$0xff]  ;;  %1288 = vperm.xlu0 %1791, %v1279_v6   ;;  %v1306_v12 = vld [vmem:[%s2469_s3 + $0x8] sm:$0xff] }
  0x7c   : > { %v1888_v11 = vld [vmem:[%s2269_s20 + $0x200] ss:$12 sps:$4 sm:$0xff]   ;;  %1310 = vperm.xlu1 %1792, %v1305_v8   ;;  %v1902_v13 = vld [vmem:[%s2269_s20 + $0x50] ss:$12 sps:$4 sm:$0xff]   ;;  %v1904_v14 = vld [vmem:[%s2269_s20 + $0xf8] ss:$12 sps:$4 sm:$0xff]  }
  0x7d   : > { %1093 = vmatpush1.bf16.msra.mxu0 %v1824_v17  ;;  %1144 = vmatpush1.bf16.msra.mxu1 %v1843_v23  ;;  %v1891_v15 = vld [vmem:[%s2269_s20 + $0x1e8] ss:$12 sps:$4 sm:$0xff]   ;;  %v1905_v16 = vld [vmem:[%s2269_s20 + $0x38] ss:$12 sps:$4 sm:$0xff]   ;;  %v1909_v17 = vld [vmem:[%s2269_s20 + $0xe0] ss:$12 sps:$4 sm:$0xff]  }
  0x7e   : > { %1094 = vmatprep.subr.bf16.mxu0 %v1826_v18  ;;  %1145 = vmatprep.subr.bf16.mxu1 %v1846_v24  ;;  %v1894_v18 = vld [vmem:[%s2269_s20 + $0x1d0] ss:$12 sps:$4 sm:$0xff]   ;;  %v1910_v19 = vld [vmem:[%s2269_s20 + $0x20] ss:$12 sps:$4 sm:$0xff]   ;;  %v1914_v20 = vld [vmem:[%s2269_s20 + $0xc8] ss:$12 sps:$4 sm:$0xff]  }
  0x7f   : > { %1315 = vperm.xlu0 %1791, %v1306_v12   ;;  %v1903_v23 = vld [vmem:[%s2269_s20 + $0x188] ss:$12 sps:$4 sm:$0xff]  }
  0x80   : > { %v1907_v24 = vld [vmem:[%s2269_s20 + $0x2a8] ss:$12 sps:$4 sm:$0xff]  }
  0x81   : > { %1095 = vmatpush1.bf16.msra.mxu0 %v1830_v21  ;;  %1146 = vmatpush1.bf16.msra.mxu1 %v1849_v27  ;;  %v1915_v21 = vld [vmem:[%s2269_s20 + $0x8] ss:$12 sps:$4 sm:$0xff]   ;;  %v1917_v27 = vld [vmem:[%s2269_s20 + $0x260] ss:$12 sps:$4 sm:$0xff]  }
  0x82   : > { %1096 = vmatprep.subr.bf16.mxu0 %v1832_v22  ;;  %1153 = vmatprep.subr.bf16.mxu1 %v1852_v28  ;;  %v1900_v22 = vld [vmem:[%s2269_s20 + $0x1a0] ss:$12 sps:$4 sm:$0xff]   ;;  %v1918_v28 = vld [vmem:[%s2269_s20 + $0x248] ss:$12 sps:$4 sm:$0xff]  }
  0x85   : > { %1097 = vmatpush2.bf16.msra.mxu0 %v1836_v25  ;;  %1154 = vmatpush2.bf16.msra.mxu1 %v1855_v31  ;;  %v1912_v25 = vld [vmem:[%s2269_s20 + $0x290] ss:$12 sps:$4 sm:$0xff]  }
  0x86   : > { %1098 = vmatprep.subr.bf16.mxu0 %v1838_v26  ;;  %1155 = vmatprep.subr.bf16.mxu1 %v1858_v32  ;;  %v1916_v26 = vld [vmem:[%s2269_s20 + $0x278] ss:$12 sps:$4 sm:$0xff]  }
  0x89   : > { %1099 = vmatpush2.bf16.msra.mxu0 %v1842_v29  ;;  %1156 = vmatpush2.bf16.msra.mxu1 %v1861_v35 }
  0x8a   : > { %1100 = vmatprep.subr.bf16.mxu0 %v1844_v30  ;;  %1157 = vmatprep.subr.bf16.mxu1 %v1864_v36 }
  0x8d   : > { %1101 = vmatpush2.bf16.msra.mxu0 %v1848_v33  ;;  %1158 = vmatpush2.bf16.msra.mxu1 %v1867_v39 }
  0x8e   : > { %1102 = vmatprep.subr.bf16.mxu0 %v1850_v34  ;;  %1159 = vmatprep.subr.bf16.mxu1 %v1870_v40 }
  0x91   : > { %1103 = vmatpush2.bf16.msra.mxu0 %v1854_v37  ;;  %1160 = vmatpush2.bf16.msra.mxu1 %v1873_v43 }
  0x92   : > { %1104 = vmatprep.subr.bf16.mxu0 %v1856_v38  ;;  %1161 = vmatprep.subr.bf16.mxu1 %v1876_v44 }
  0x95   : > { %1105 = vmatpush2.bf16.msra.mxu0 %v1860_v41  ;;  %1162 = vmatpush2.bf16.msra.mxu1 %v1879_v47 }
  0x96   : > { %1106 = vmatprep.subr.bf16.mxu0 %v1862_v42  ;;  %1735 = vmatprep.subr.bf16.mxu1 %v1889_v50 }
  0x98   : > { %1164 = vmatmul.mubr.bf16.vlgmr.msra.gmra.mxu1 %v2334_v49 }
  0x99   : > { %1107 = vmatpush2.bf16.msra.mxu0 %v1866_v45  ;;  %1736 = vmatpush3.bf16.msra.mxu1 %v1890_v56 }
  0x9a   : > { %1108 = vmatprep.subr.bf16.mxu0 %v1868_v46  ;;  %1737 = vmatprep.subr.bf16.mxu1 %v1892_v57 }
  0x9b   : > { %1709 = vmatprep.mubr.msk.bf16.mxu1 %vm1073_vm0, %v2341_v58 }
  0x9d   : > { %1109 = vmatpush2.bf16.msra.mxu0 %v1872_v51  ;;  %1738 = vmatpush3.bf16.msra.mxu1 %v1893_v61 }
  0x9e   : > { %1110 = vmatprep.subr.bf16.mxu0 %v1874_v55  ;;  %1739 = vmatprep.subr.bf16.mxu1 %v1895_v62 }
  0xa0   : > { %1174 = vmatmul.mubr.bf16.gmra.mxu1 %v2358_v1 }
  0xa1   : > { %1111 = vmatpush2.bf16.msra.mxu0 %v1878_v59  ;;  %1740 = vmatpush3.bf16.msra.mxu1 %v1896_v2 }
  0xa2   : > { %1230 = vmatprep.subr.bf16.mxu0 %v1943_v54  ;;  %1741 = vmatprep.subr.bf16.mxu1 %v1898_v3 }
  0xa3   : > { %1214 = vmatprep.mubr.bf16.mxu1 %v2253_v52  ;;  %v1307_v52 = vld [vmem:[%s2469_s3 + $0x10] sm:$0xff] }
  0xa4   : > { %1113 = vmatmul.mubr.bf16.vlgmr.msra.gmra.mxu0 %v2348_v60  ;;  %1320 = vperm.xlu1 %1792, %v1307_v52  }
  0xa5   : > { %1231 = vmatpush1.bf16.msra.mxu0 %v1886_v0  ;;  %1122 = vmatprep.mubr.bf16.mxu0 %v1618_v4 }
  0xa6   : > { %1232 = vmatprep.subr.bf16.mxu0 %v1943_v54  ;;  %1742 = vmatpush3.bf16.msra.mxu1 %v1899_v7 }
  0xa7   : > { %1743 = vmatprep.subr.bf16.mxu1 %v1901_v9 }
  0xa9   : > { %1233 = vmatpush1.bf16.msra.mxu0 %v1887_v5 }
  0xaa   : > { %1234 = vmatprep.subr.bf16.mxu0 %v1943_v54  ;;  %1744 = vmatpush3.bf16.msra.mxu1 %v1902_v13 }
  0xab   : > { %1745 = vmatprep.subr.bf16.mxu1 %v1904_v14 }
  0xac   : > { %1123 = vmatmul.mubr.bf16.gmra.mxu0 %v1617_v10 }
  0xad   : > { %1235 = vmatpush1.bf16.msra.mxu0 %v1888_v11  ;;  %1710 = vmatprep.mubr.msk.bf16.mxu0 %vm1073_vm0, %v2258_v53  ;;  %v1897_v53 = vld [vmem:[%s2269_s20 + $0x1b8] ss:$12 sps:$4 sm:$0xff]  }
  0xae   : > { %1236 = vmatprep.subr.bf16.mxu0 %v1943_v54  ;;  %1746 = vmatpush3.bf16.msra.mxu1 %v1905_v16 }
  0xaf   : > { %1747 = vmatprep.subr.bf16.mxu1 %v1909_v17 }
  0xb1   : > { %1237 = vmatpush1.bf16.msra.mxu0 %v1891_v15 }
  0xb2   : > { %1238 = vmatprep.subr.bf16.mxu0 %v1943_v54  ;;  %1748 = vmatpush3.bf16.msra.mxu1 %v1910_v19 }
  0xb3   : > { %1749 = vmatprep.subr.bf16.mxu1 %v1914_v20 }
  0xb5   : > { %1239 = vmatpush1.bf16.msra.mxu0 %v1894_v18 }
  0xb6   : > { %1240 = vmatprep.subr.bf16.mxu0 %v1943_v54  ;;  %1750 = vmatpush3.bf16.msra.mxu1 %v1915_v21 }
  0xb9   : > { %1241 = vmatpush1.bf16.msra.mxu0 %v1897_v53  ;;  %1215 = vmatmul.mubr.bf16.vlgmr.msra.gmra.mxu1 %v2348_v60 }
  0xba   : > { %1242 = vmatprep.subr.bf16.mxu0 %v1943_v54  ;;  %1222 = vmatprep.mubr.bf16.mxu1 %v1618_v4 }
  0xbd   : > { %1243 = vmatpush1.bf16.msra.mxu0 %v1900_v22 }
  0xbe   : > { %1244 = vmatprep.subr.bf16.mxu0 %v1943_v54 }
  0xc1   : > { %1245 = vmatpush1.bf16.msra.mxu0 %v1903_v23  ;;  %1223 = vmatmul.mubr.bf16.gmra.mxu1 %v1617_v10 }
  0xc2   : > { %1252 = vmatprep.subr.bf16.mxu0 %v1943_v54 }
  0xc5   : > { %1253 = vmatpush2.bf16.msra.mxu0 %v1907_v24 }
  0xc6   : > { %1254 = vmatprep.subr.bf16.mxu0 %v1943_v54 }
  0xc9   : > { %1255 = vmatpush2.bf16.msra.mxu0 %v1912_v25 }
  0xca   : > { %1256 = vmatprep.subr.bf16.mxu0 %v1943_v54 }
  0xcd   : > { %1257 = vmatpush2.bf16.msra.mxu0 %v1916_v26 }
  0xce   : > { %1258 = vmatprep.subr.bf16.mxu0 %v1943_v54 }
  0xd1   : > { %1259 = vmatpush2.bf16.msra.mxu0 %v1917_v27 }
  0xd2   : > { %1260 = vmatprep.subr.bf16.mxu0 %v1943_v54 }
  0xd5   : > { %1261 = vmatpush2.bf16.msra.mxu0 %v1918_v28 }
  0xd8   : > { %1263 = vmatmul.mubr.bf16.vlgmr.msra.gmra.mxu0 %v2334_v49 }
  0xd9   : > { %1711 = vmatprep.mubr.msk.bf16.mxu0 %vm1073_vm0, %v2341_v58 }
  0xde   : > { %v2418_v30 = vpop.permute.xlu0 %1283  ;;  %v2420_v32 = vpop.permute.xlu1 %1293 }
  0xe0   : > { %1271 = vmatmul.mubr.bf16.gmra.mxu0 %v2358_v1 }
  0xf6   : > { %v2422_v36 = vpop.permute.xlu0 %1288 }
  0xf7   : > { %v1311_v39 = vpop.permute.xlu1 %1310 }
  0xfa   : > { %v1316_v49 = vpop.permute.xlu0 %1315 }
 0x11f   : > { %v1321_v0 = vpop.permute.xlu1 %1320 }
 0x158   : > { %v1165_v29 = vpop.f32.mrf.mxu1 }
 0x15a   : > { %v1167_v31 = vpop.f32.mrf.mxu1 }
 0x15c   : > { %v1169_v33 = vpop.f32.mrf.mxu1 }
 0x15e   : > { %v1171_v34 = vpop.f32.mrf.mxu1 }
 0x160   : > { %v1175_v37 = vpop.f32.mrf.mxu1 }
 0x162   : > { %v1177_v42 = vpop.f32.mrf.mxu1 }
 0x164   : > { %v1114_v35 = vpop.f32.mrf.mxu0  ;;  %v1179_v47 = vpop.f32.mrf.mxu1 }
 0x165   : > { %v1166_v54 = vadd.f32 %v1165_v29, %v1114_v35 }
 0x166   : > { %v1116_v38 = vpop.f32.mrf.mxu0  ;;  %v1180_v57 = vpop.f32.mrf.mxu1 }
 0x167   : > { %v1296_v40 = vmul.f32 %v2418_v30, %v1166_v54  ;;  %v1168_v41 = vadd.f32 %v1167_v31, %v1116_v38 }
 0x168   : > { %v1118_v43 = vpop.f32.mrf.mxu0 }
 0x169   : > { %v1297_v44 = vmul.f32 %v2418_v30, %v1168_v41  ;;  %v1170_v45 = vadd.f32 %v1169_v33, %v1118_v43  ;;  %v1323_v46 = vadd.f32 %v1311_v39, %v1296_v40 }
 0x16a   : > { %v1120_v48 = vpop.f32.mrf.mxu0 }
 0x16b   : > { %v1299_v50 = vmul.f32 %v2422_v36, %v1170_v45  ;;  %v1324_v51 = vadd.f32 %v1311_v39, %v1297_v44  ;;  %v1332_v55 = vmax.f32 %v1323_v46, 0.0  ;;  %v1172_v56 = vadd.f32 %v1171_v34, %v1120_v48 }
 0x16c   : > { %v1124_v58 = vpop.f32.mrf.mxu0 }
 0x16d   : > { %v1333_v59 = vmax.f32 %v1324_v51, 0.0  ;;  %v1300_v60 = vmul.f32 %v2422_v36, %v1172_v56  ;;  %v1326_v61 = vadd.f32 %v1316_v49, %v1299_v50  ;;  %v1176_v62 = vadd.f32 %v1175_v37, %v1124_v58 }
 0x16e   : > { %v1126_v63 = vpop.f32.mrf.mxu0 }
 0x16f   : > { %v1728_v1 = vpack.c.bf16 %v1333_v59, %v1332_v55  ;;  %v1327_v2 = vadd.f32 %v1316_v49, %v1300_v60  ;;  %v1302_v3 = vmul.f32 %v2420_v32, %v1176_v62  ;;  %v1178_v4 = vadd.f32 %v1177_v42, %v1126_v63 }
 0x170   : > { %v1128_v5 = vpop.f32.mrf.mxu0  ;;  %v1335_v6 = vmax.f32 %v1326_v61, 0.0 }
 0x171   : > { %1374 = vst [vmem:[%s2431_s15] sm:$0xff] %v1728_v1  ;;  %v1336_v7 = vmax.f32 %v1327_v2, 0.0  ;;  %v1329_v8 = vadd.f32 %v1321_v0, %v1302_v3  ;;  %v1303_v9 = vmul.f32 %v2420_v32, %v1178_v4 }
 0x172   : > { %v1129_v10 = vpop.f32.mrf.mxu0 }
 0x173   : > { %v1730_v11 = vpack.c.bf16 %v1336_v7, %v1335_v6  ;;  %v1330_v12 = vadd.f32 %v1321_v0, %v1303_v9  ;;  %v1338_v13 = vmax.f32 %v1329_v8, 0.0 }
 0x175   : > { %1376 = vst [vmem:[%s2431_s15 + $0xc] sm:$0xff] %v1730_v11  ;;  %v1339_v14 = vmax.f32 %v1330_v12, 0.0 }
 0x177   : > { %v1732_v52 = vpack.c.bf16 %v1339_v14, %v1338_v13 }
 0x179   : > { %1378 = vst [vmem:[%s2431_s15 + $0x18] sm:$0xff] %v1732_v52  ;;  %v1751_v15 = vpop.f32.mrf.mxu1 }
 0x17b   : > { %v1752_v16 = vpop.f32.mrf.mxu1 }
 0x17c   : > { %v1753_v22 = vadd.f32 %v1752_v16, %v1751_v15 }
 0x17d   : > { %v1754_v17 = vpop.f32.mrf.mxu1 }
 0x17f   : > { %v1755_v18 = vpop.f32.mrf.mxu1 }
 0x180   : > { %v1756_v26 = vadd.f32 %v1755_v18, %v1754_v17 }
 0x181   : > { %v1757_v19 = vpop.f32.mrf.mxu1 }
 0x183   : > { %v1758_v20 = vpop.f32.mrf.mxu1 }
 0x184   : > { %v1759_v34 = vadd.f32 %v1758_v20, %v1757_v19 }
 0x185   : > { %v1760_v53 = vpop.f32.mrf.mxu1 }
 0x187   : > { %v1761_v21 = vpop.f32.mrf.mxu1 }
 0x198   : > { %v1264_v23 = vpop.f32.mrf.mxu0 }
 0x199   : > { %v1265_v24 = vadd.f32 %v1753_v22, %v1264_v23 }
 0x19a   : > { %v1266_v25 = vpop.f32.mrf.mxu0 }
 0x19b   : > { %v1298_v27 = vmul.f32 %v2418_v30, %v1265_v24 }
 0x19c   : > { %v1267_v28 = vpop.f32.mrf.mxu0 }
 0x19d   : > { %v1325_v29 = vadd.f32 %v1311_v39, %v1298_v27  ;;  %v1268_v31 = vadd.f32 %v1756_v26, %v1267_v28 }
 0x19e   : > { %v1269_v33 = vpop.f32.mrf.mxu0 }
 0x19f   : > { %v1334_v35 = vmax.f32 %v1325_v29, 0.0  ;;  %v1301_v54 = vmul.f32 %v2422_v36, %v1268_v31  ;;  %v1406_v36 = vld [vmem:[%s2431_s15 + $0xc] sm:$0xff] (%p1999_p5) }
 0x1a0   : > { %v1272_v37 = vpop.f32.mrf.mxu0  ;;  %1407 = vst [vmem:[%s1389_s23 + $0x18] sm:$0xff] (%p1999_p5), %v1406_v36 }
 0x1a1   : > { %v1729_v38 = vpack.c.bf16 %v1334_v35, %v1334_v35  ;;  %v1328_v40 = vadd.f32 %v1316_v49, %v1301_v54  ;;  %v1273_v41 = vadd.f32 %v1759_v34, %v1272_v37  ;;  %v1408_v49 = vld [vmem:[%s2431_s15 + $0x18] sm:$0xff] (%p1999_p5) }
 0x1a2   : > { %v1274_v42 = vpop.f32.mrf.mxu0  ;;  %1409 = vst [vmem:[%s1389_s23 + $0x30] sm:$0xff] (%p1999_p5), %v1408_v49 }
 0x1a3   : > { %1375 = vst [vmem:[%s2431_s15 + $0x8] sm:$0xf] %v1729_v38  ;;  %v1337_v43 = vmax.f32 %v1328_v40, 0.0  ;;  %v1304_v44 = vmul.f32 %v2420_v32, %v1273_v41  ;;  %v1404_v32 = vld [vmem:[%s2431_s15] sm:$0xff] (%p1999_p5) }
 0x1a4   : > { %v1275_v30 = vpop.f32.mrf.mxu0  ;;  %1405 = vst [vmem:[%s1389_s23] sm:$0xff] (%p1999_p5), %v1404_v32 }
 0x1a5   : > { %v1731_v45 = vpack.c.bf16 %v1337_v43, %v1337_v43  ;;  %v1331_v39 = vadd.f32 %v1321_v0, %v1304_v44 }
 0x1a6   : > { %v1276_v46 = vpop.f32.mrf.mxu0 }
 0x1a7   : > { %1377 = vst [vmem:[%s2431_s15 + $0x14] sm:$0xf] %v1731_v45  ;;  %v1340_v47 = vmax.f32 %v1331_v39, 0.0  ;;  %1386 = sbr.rel (!%p1999_p5) target bundleno = 436 (0x1b4), region = 66 }
 0x1a9   : > { %v1733_v48 = vpack.c.bf16 %v1340_v47, %v1340_v47 }
 0x1aa   : > { %v1719_v50 = vld [vmem:[%s2431_s15 + $0x8] sm:$0xf] (%p1999_p5) }
 0x1ab   : > { %1379 = vst [vmem:[%s2431_s15 + $0x20] sm:$0xf] %v1733_v48  ;;  %1720 = vst [vmem:[%s1389_s23 + $0x8] sm:$0xf] (%p1999_p5), %v1719_v50 }
 0x1ae   : > { %v1721_v51 = vld [vmem:[%s2431_s15 + $0x14] sm:$0xf] }
 0x1af   : > { %1722 = vst [vmem:[%s1389_s23 + $0x20] sm:$0xf] %v1721_v51 }
 0x1b2   : > { %v1723_v55 = vld [vmem:[%s2431_s15 + $0x20] sm:$0xf] }
 0x1b3   : > { %1724 = vst [vmem:[%s1389_s23 + $0x38] sm:$0xf] %v1723_v55 }
 0x1b4 PF: > { %p11_p10 = scmp.ge.s32.totalorder %s1986_s19, 4   ;;  %s2472_s15 = smov %s1937_s16 }
 0x1b5   : > { %s2473_s16 = smov %s1997_s22  ;;  %s2474_s17 = smov %s1986_s19 }
 0x1b6   :  { %13 = sbr.rel (!%p11_p10) target bundleno = 2 (0x2), region = 135 }

</bundles_post_ra>
